<compile_context>
chip_gen: v5e
topology: v5e:2x2
jax: 0.10.0
libtpu: 0.0.40
codegen_flags: <defaults>
</compile_context>

<pallas_src>
import functools

import numpy as np
import jax
import jax.numpy as jnp
from jax.experimental import pallas as pl
from jax.experimental.pallas import tpu as pltpu


# ----------------------------------------------------------------------------
# small helpers (glue, numpy / jnp)
# ----------------------------------------------------------------------------

def window_partition_jax(x, ws):
    # x: (B, H, W, C) -> (B*nW, ws, ws, C)
    B, H, W, C = x.shape
    x = x.reshape(B, H // ws, ws, W // ws, ws, C)
    return x.transpose(0, 1, 3, 2, 4, 5).reshape(-1, ws, ws, C)


def window_reverse_jax(windows, ws, H, W):
    # windows: (B*nW, ws, ws, C) -> (B, H, W, C)
    B = windows.shape[0] // (H * W // ws // ws)
    x = windows.reshape(B, H // ws, W // ws, ws, ws, -1)
    return x.transpose(0, 1, 3, 2, 4, 5).reshape(B, H, W, -1)


def relative_position_index_np(ws):
    coords = np.stack(np.meshgrid(np.arange(ws), np.arange(ws), indexing="ij"))
    cf = coords.reshape(2, -1)
    rel = cf[:, :, None] - cf[:, None, :]
    rel = rel.transpose(1, 2, 0).astype(np.int64)
    rel[:, :, 0] += ws - 1
    rel[:, :, 1] += ws - 1
    rel[:, :, 0] *= 2 * ws - 1
    return rel.sum(-1)  # (N, N)


def create_mask_np(H, W, ws, ss):
    img_mask = np.zeros((1, H, W, 1), np.float32)
    h_slices = (slice(0, -ws), slice(-ws, -ss), slice(-ss, None))
    w_slices = (slice(0, -ws), slice(-ws, -ss), slice(-ss, None))
    cnt = 0
    for h in h_slices:
        for w in w_slices:
            img_mask[:, h, w, :] = cnt
            cnt += 1
    mw = (img_mask.reshape(1, H // ws, ws, W // ws, ws, 1)
          .transpose(0, 1, 3, 2, 4, 5).reshape(-1, ws * ws))
    attn_mask = mw[:, None, :] - mw[:, :, None]
    attn_mask = np.where(attn_mask != 0, -100.0, 0.0).astype(np.float32)
    return attn_mask  # (nW, N, N)


def _ln(x, g, b, eps=1e-5):
    mu = jnp.mean(x, axis=-1, keepdims=True)
    var = jnp.mean(jnp.square(x - mu), axis=-1, keepdims=True)
    return (x - mu) / jnp.sqrt(var + eps) * g + b


def _erf(x):
    # Abramowitz & Stegun 7.1.26 rational approximation (|err| < 1.5e-7).
    # The 1/(1+p*|x|) divide goes to the EUP slot via approx reciprocal.
    a1, a2, a3, a4, a5 = 0.254829592, -0.284496736, 1.421413741, -1.453152027, 1.061405429
    p = 0.3275911
    sgn = jnp.where(x >= 0.0, 1.0, -1.0)
    ax = jnp.abs(x)
    t = pl.reciprocal(1.0 + p * ax, approx=True)
    poly = ((((a5 * t + a4) * t + a3) * t + a2) * t + a1) * t
    return sgn * (1.0 - poly * jnp.exp(-ax * ax))


@functools.lru_cache(maxsize=1)
def _vmem_cap_bytes():
    """Physical VMEM capacity; conservative 64 MiB (v7x per-TC) fallback."""
    try:
        cap = int(pltpu.get_tpu_info().vmem_capacity_bytes)
        if cap > 0:
            return cap
    except Exception:
        pass
    return 64 * 2**20


def _vmem_budget(need_bytes):
    cap = _vmem_cap_bytes()
    ceiling = max(16 * 2**20, (cap * 5) // 8)   # ~40 MiB on 64-MiB parts, ~80 on 128
    limit = max(32 * 2**20, int(need_bytes) + (4 << 20))
    return int(min(limit, ceiling))


def _pick_wb(nW, N, B_):
    """Windows per attention grid step: largest divisor of nW keeping the
    flattened row count (Wb*N) under a VMEM-derived cap, with >=2 total grid
    steps when possible."""
    max_rows = 1024 if _vmem_cap_bytes() >= 96 * 2**20 else 512
    divs = [d for d in range(1, nW + 1) if nW % d == 0]
    cand = [d for d in divs if d * N <= max_rows] or [1]
    wb = max(cand)
    if B_ // wb < 2:
        smaller = [d for d in cand if B_ // d >= 2]
        if smaller:
            wb = max(smaller)
    return wb


def _pick_tm(rows):
    """MLP row tile: VMEM-derived max for big inputs, ~rows/2 (8-aligned) for
    small ones so the grid still has >=2 steps (megacore)."""
    tmax = 512 if _vmem_cap_bytes() >= 96 * 2**20 else 256
    if rows >= 2 * tmax:
        return tmax
    return min(tmax, max(8, (((rows + 1) // 2) + 7) // 8 * 8))


# ----------------------------------------------------------------------------
# Pallas kernels
# ----------------------------------------------------------------------------

def _attn_kernel(xw_ref, bias_ref, wqkv_ref, bqkv_ref, wprojh_ref, bproj_ref,
                 g1_ref, b1_ref, o_ref, *, heads, hd, C, Wb, N, cdt, eps=1e-5):
    # xw_ref   : (Wb, N, C)          raw shifted/partitioned tokens (pre-LN)
    # bias_ref : (heads, Wb, N, N)   rel-pos bias + shift mask (cdt, e.g. bf16)
    # wprojh_ref: (heads, hd, C)     per-head output projection (head-merge
    #                                folded into MXU accumulation)
    rows = Wb * N
    x = xw_ref[...].astype(jnp.float32).reshape(rows, C)

    # LayerNorm (norm1) in f32
    mu = jnp.mean(x, axis=-1, keepdims=True)
    var = jnp.mean(jnp.square(x - mu), axis=-1, keepdims=True)
    xn = (x - mu) * jax.lax.rsqrt(var + eps) * g1_ref[...] + b1_ref[...]

    # Fused qkv projection: one (rows, C)x(C, 3C) MXU matmul, bf16 in / f32 acc.
    # The qk scale is pre-folded into the q columns of wqkv / bqkv.
    qkv = jnp.dot(xn.astype(cdt), wqkv_ref[...],
                  preferred_element_type=jnp.float32) + bqkv_ref[...]
    qkv = qkv.reshape(Wb, N, 3 * C)

    wproj_all = wprojh_ref[...]     # (heads, hd, C) in cdt
    bias_all = bias_ref[...]        # (heads, Wb, N, N)

    # Per-head attention, batched over the Wb windows.  Only lane slices of the
    # qkv output remain (no concats); the head-merge + output projection is a
    # per-head (rows, hd)x(hd, C) matmul accumulated in f32 (MXU accumulation).
    acc = jnp.zeros((rows, C), jnp.float32)
    for h in range(heads):          # unrolled at trace time (heads is small)
        q_h = qkv[:, :, h * hd:(h + 1) * hd].astype(cdt)
        k_h = qkv[:, :, C + h * hd:C + (h + 1) * hd].astype(cdt)
        v_h = qkv[:, :, 2 * C + h * hd:2 * C + (h + 1) * hd].astype(cdt)

        s = jnp.einsum('wnd,wmd->wnm', q_h, k_h,
                       preferred_element_type=jnp.float32)
        s = s + bias_all[h].astype(jnp.float32)

        # softmax in f32; divide goes to the EUP slot
        s = s - jnp.max(s, axis=-1, keepdims=True)
        p = jnp.exp(s)
        p = p * pl.reciprocal(jnp.sum(p, axis=-1, keepdims=True), approx=True)

        o_h = jnp.einsum('wnm,wmd->wnd', p.astype(cdt), v_h,
                         preferred_element_type=jnp.float32)   # (Wb, N, hd)
        acc = acc + jnp.dot(o_h.reshape(rows, hd).astype(cdt), wproj_all[h],
                            preferred_element_type=jnp.float32)

    out = acc + bproj_ref[...]
    o_ref[...] = out.reshape(o_ref.shape).astype(o_ref.dtype)


def _mlp_kernel(sc_ref, at_ref, g2_ref, b2_ref, w1_ref, bb1_ref, w2_ref,
                bb2_ref, o_ref, *, cdt, eps=1e-5):
    # residual add (shortcut + attention output) in f32
    x = sc_ref[...].astype(jnp.float32) + at_ref[...].astype(jnp.float32)

    # LayerNorm (norm2)
    mu = jnp.mean(x, axis=-1, keepdims=True)
    var = jnp.mean(jnp.square(x - mu), axis=-1, keepdims=True)
    xn = (x - mu) * jax.lax.rsqrt(var + eps) * g2_ref[...] + b2_ref[...]

    # MLP: fc1 -> exact GELU (erf) -> fc2 (bf16 MXU inputs, f32 accumulate)
    h = jnp.dot(xn.astype(cdt), w1_ref[...],
                preferred_element_type=jnp.float32) + bb1_ref[...]
    h = 0.5 * h * (1.0 + _erf(h * 0.7071067811865476))
    h = jnp.dot(h.astype(cdt), w2_ref[...],
                preferred_element_type=jnp.float32) + bb2_ref[...]

    o_ref[...] = (x + h).astype(o_ref.dtype)


# ----------------------------------------------------------------------------
# pallas_call wrappers
# ----------------------------------------------------------------------------

def attention_pallas(xw, bias_hw, kp, *, num_heads, nW, cdt):
    B_, N, C = xw.shape
    hd = C // num_heads
    Wb = _pick_wb(nW, N, B_)
    nwb = nW // Wb                      # window-blocks per image
    B = B_ // nW                        # images

    kernel = functools.partial(_attn_kernel, heads=num_heads, hd=hd, C=C,
                               Wb=Wb, N=N, cdt=cdt)

    wdt = kp["wqkv_t"].dtype.itemsize
    wbytes = int((kp["wqkv_t"].size + kp["wproj_h"].size) * wdt)
    tok_blk = Wb * N * C * xw.dtype.itemsize
    bias_blk = num_heads * Wb * N * N * bias_hw.dtype.itemsize
    temps = (5 * Wb * N * C + 3 * Wb * N * N) * 4
    need = 2 * (2 * tok_blk + bias_blk) + 2 * wbytes + temps
    vmem_limit = _vmem_budget(need)

    cost = pl.CostEstimate(
        flops=int(B_ * (8 * N * C * C + 4 * N * N * C + 4 * num_heads * N * N)),
        transcendentals=int(B_ * num_heads * N * N),
        bytes_accessed=int(2 * B_ * N * C * xw.dtype.itemsize
                           + num_heads * nW * N * N * bias_hw.dtype.itemsize
                           + wbytes))

    # 2-D grid: window-block axis OUTER, image axis INNER.  The bias block
    # index is constant over the inner axis, so its DMA is skipped (reused)
    # across consecutive steps instead of being re-fetched B times.
    tok_map = lambda j, b: (b * nwb + j, 0, 0)

    return pl.pallas_call(
        kernel,
        out_shape=jax.ShapeDtypeStruct((B_, N, C), xw.dtype),
        grid_spec=pltpu.PrefetchScalarGridSpec(
            num_scalar_prefetch=0,
            grid=(nwb, B),
            in_specs=[
                pl.BlockSpec((Wb, N, C), tok_map),                      # tokens
                pl.BlockSpec((num_heads, Wb, N, N),
                             lambda j, b: (0, j, 0, 0)),                # bias
                pl.BlockSpec((C, 3 * C), lambda j, b: (0, 0)),          # Wqkv^T
                pl.BlockSpec((1, 3 * C), lambda j, b: (0, 0)),          # bqkv
                pl.BlockSpec((num_heads, hd, C),
                             lambda j, b: (0, 0, 0)),                   # Wproj (per head)
                pl.BlockSpec((1, C), lambda j, b: (0, 0)),              # bproj
                pl.BlockSpec((1, C), lambda j, b: (0, 0)),              # norm1 g
                pl.BlockSpec((1, C), lambda j, b: (0, 0)),              # norm1 b
            ],
            out_specs=pl.BlockSpec((Wb, N, C), tok_map),
        ),
        compiler_params=pltpu.CompilerParams(
            dimension_semantics=("parallel", "parallel"),
            vmem_limit_bytes=vmem_limit),
        cost_estimate=cost,
    )(xw, bias_hw, kp["wqkv_t"], kp["bqkv"], kp["wproj_h"], kp["bproj"],
      kp["g1"], kp["b1"])


def mlp_pallas(shortcut, attn_out, kp, *, cdt):
    rows, C = shortcut.shape
    hidden = kp["w1_t"].shape[1]
    TM = _pick_tm(rows)
    rows_p = -(-rows // TM) * TM
    if rows_p != rows:
        pad = rows_p - rows
        shortcut = jnp.pad(shortcut, ((0, pad), (0, 0)))
        attn_out = jnp.pad(attn_out, ((0, pad), (0, 0)))

    wdt = kp["w1_t"].dtype.itemsize
    wbytes = int((kp["w1_t"].size + kp["w2_t"].size) * wdt)
    blk = TM * C * shortcut.dtype.itemsize
    temps = (2 * TM * hidden + 3 * TM * C) * 4
    need = 2 * 3 * blk + 2 * wbytes + temps
    vmem_limit = _vmem_budget(need)

    cost = pl.CostEstimate(
        flops=int(4 * rows_p * C * hidden),
        transcendentals=int(rows_p * hidden),
        bytes_accessed=int(3 * rows_p * C * 4 + wbytes))

    kernel = functools.partial(_mlp_kernel, cdt=cdt)
    out = pl.pallas_call(
        kernel,
        out_shape=jax.ShapeDtypeStruct((rows_p, C), shortcut.dtype),
        grid_spec=pltpu.PrefetchScalarGridSpec(
            num_scalar_prefetch=0,
            grid=(rows_p // TM,),
            in_specs=[
                pl.BlockSpec((TM, C), lambda i: (i, 0)),       # shortcut
                pl.BlockSpec((TM, C), lambda i: (i, 0)),       # attention out
                pl.BlockSpec((1, C), lambda i: (0, 0)),        # norm2 gamma
                pl.BlockSpec((1, C), lambda i: (0, 0)),        # norm2 beta
                pl.BlockSpec((C, hidden), lambda i: (0, 0)),   # fc1 W^T
                pl.BlockSpec((1, hidden), lambda i: (0, 0)),   # fc1 b
                pl.BlockSpec((hidden, C), lambda i: (0, 0)),   # fc2 W^T
                pl.BlockSpec((1, C), lambda i: (0, 0)),        # fc2 b
            ],
            out_specs=pl.BlockSpec((TM, C), lambda i: (i, 0)),
        ),
        compiler_params=pltpu.CompilerParams(
            dimension_semantics=("parallel",),
            vmem_limit_bytes=vmem_limit),
        cost_estimate=cost,
    )(shortcut, attn_out, kp["g2"], kp["b2"], kp["w1_t"], kp["bb1"],
      kp["w2_t"], kp["bb2"])
    return out[:rows]


# ----------------------------------------------------------------------------
# pure-JAX reference (mirrors PyTorch math; `cdt` mirrors the kernel's
# matmul-input casts so a tight comparison is possible)
# ----------------------------------------------------------------------------

def attention_ref(xw, bias_hw, kp, *, num_heads, nW, cdt):
    B_, N, C = xw.shape
    hd = C // num_heads
    xn = _ln(xw, kp["g1"][0], kp["b1"][0])
    qkv = jnp.einsum("bnc,cf->bnf", xn.astype(cdt), kp["wqkv_t"].astype(cdt),
                     preferred_element_type=jnp.float32) + kp["bqkv"][0]
    qkv = qkv.reshape(B_, N, 3, num_heads, hd).transpose(2, 0, 3, 1, 4)
    q, k, v = qkv[0], qkv[1], qkv[2]       # qk scale already folded into weights
    s = jnp.einsum("bhnd,bhmd->bhnm", q.astype(cdt), k.astype(cdt),
                   preferred_element_type=jnp.float32)
    bias = jnp.transpose(bias_hw, (1, 0, 2, 3)).astype(jnp.float32)
    bias = jnp.tile(bias, (B_ // nW, 1, 1, 1))             # (B_, heads, N, N)
    s = s + bias
    p = jax.nn.softmax(s, axis=-1)
    o = jnp.einsum("bhnm,bhmd->bhnd", p.astype(cdt), v.astype(cdt),
                   preferred_element_type=jnp.float32)
    o = o.transpose(0, 2, 1, 3).reshape(B_, N, C)
    wproj_t = kp["wproj_h"].reshape(C, C)
    return jnp.einsum("bnc,cd->bnd", o.astype(cdt), wproj_t.astype(cdt),
                      preferred_element_type=jnp.float32) + kp["bproj"][0]


def mlp_ref(shortcut, attn_out, kp, *, cdt):
    x = shortcut + attn_out
    xn = _ln(x, kp["g2"][0], kp["b2"][0])
    h = jnp.dot(xn.astype(cdt), kp["w1_t"].astype(cdt),
                preferred_element_type=jnp.float32) + kp["bb1"][0]
    h = jax.nn.gelu(h, approximate=False)     # torch nn.GELU default (erf)
    h = jnp.dot(h.astype(cdt), kp["w2_t"].astype(cdt),
                preferred_element_type=jnp.float32) + kp["bb2"][0]
    return x + h


# ----------------------------------------------------------------------------
# full SwinTransformerLayer forward (shared glue, pallas or reference core)
# ----------------------------------------------------------------------------

def swin_forward(x, kp, *, num_heads, window_size, shift_size, use_pallas, cdt):
    B, C, H_, W_ = x.shape
    ws, ss = window_size, shift_size

    padded = (min(H_, W_) < ws) or (H_ % ws != 0)    # same condition as torch
    if padded:
        pad_r = (ws - W_ % ws) % ws
        pad_b = (ws - H_ % ws) % ws
        x = jnp.pad(x, ((0, 0), (0, 0), (0, pad_b), (0, pad_r)))
    B, C, H, W = x.shape
    N = ws * ws
    nW = (H // ws) * (W // ws)

    # LayerNorm(norm1) is per-token and commutes with roll/window_partition,
    # so shift/partition the raw tokens and apply the norm inside the kernel.
    xim = jnp.transpose(x, (0, 2, 3, 1))                      # (B, H, W, C)
    if ss > 0:
        xim = jnp.roll(xim, shift=(-ss, -ss), axis=(1, 2))
        mask = jnp.asarray(create_mask_np(H, W, ws, ss))
    else:
        mask = jnp.zeros((nW, N, N), jnp.float32)

    xw = window_partition_jax(xim, ws).reshape(-1, N, C)      # (B*nW, N, C)
    B_ = xw.shape[0]

    # relative-position bias (heads, N, N) combined with the shift mask into
    # one (heads, nW, N, N) bias -- streamed in the matmul dtype (bf16).
    rel_index = relative_position_index_np(ws)
    rpb = kp["rpb_table"][rel_index.reshape(-1)].reshape(N, N, num_heads)
    rpb = jnp.transpose(rpb, (2, 0, 1))                       # (heads, N, N)
    bias_hw = (rpb[:, None, :, :] + mask[None, :, :, :]).astype(cdt)

    attn_fn = attention_pallas if use_pallas else attention_ref
    attn_out = attn_fn(xw, bias_hw, kp, num_heads=num_heads, nW=nW, cdt=cdt)

    # The MLP runs directly in (shifted-)window token order: per-token LN/MLP
    # commute with the roll/partition permutation, so xw itself is the residual
    # shortcut and no window_reverse/roll HBM round trip is needed here.
    mlp_fn = mlp_pallas if use_pallas else mlp_ref
    y_w = mlp_fn(xw.reshape(B_ * N, C), attn_out.reshape(B_ * N, C), kp,
                 cdt=cdt)

    # Single reverse + roll, fused with the final NCHW transpose.
    y_im = window_reverse_jax(y_w.reshape(-1, ws, ws, C), ws, H, W)
    if ss > 0:
        y_im = jnp.roll(y_im, shift=(ss, ss), axis=(1, 2))
    y = jnp.transpose(y_im, (0, 3, 1, 2))                     # (B, C, H, W)
    if padded:
        y = y[:, :, :H_, :W_]
    return y


# ----------------------------------------------------------------------------
# deterministic parameter init (shapes from the PyTorch __init__) + prep
# ----------------------------------------------------------------------------

def init_params(key, dim, num_heads, ws, mlp_ratio):
    hidden = int(dim * mlp_ratio)
    n_rel = (2 * ws - 1) * (2 * ws - 1)
    ks = jax.random.split(key, 13)

    def nrm(k, shape, std=0.02):
        return std * jax.random.normal(k, shape, jnp.float32)

    return dict(
        g1=1.0 + nrm(ks[0], (1, dim), 0.1), b1=nrm(ks[1], (1, dim), 0.1),
        wqkv=nrm(ks[2], (3 * dim, dim)), bqkv=nrm(ks[3], (1, 3 * dim)),
        wproj=nrm(ks[4], (dim, dim)), bproj=nrm(ks[5], (1, dim)),
        rpb_table=nrm(ks[6], (n_rel, num_heads)),
        g2=1.0 + nrm(ks[7], (1, dim), 0.1), b2=nrm(ks[8], (1, dim), 0.1),
        w1=nrm(ks[9], (hidden, dim)), bb1=nrm(ks[10], (1, hidden)),
        w2=nrm(ks[11], (dim, hidden)), bb2=nrm(ks[12], (1, dim)),
    )


def prepare_params(p, cdt, num_heads):
    """Pre-transpose / pre-cast the matmul weights once (outside the forward).
    The qk scale is folded into the q columns of the qkv projection and the
    output projection is stored per head (heads, hd, C) so the head-merge
    becomes MXU accumulation inside the kernel."""
    dim = p["wproj"].shape[0]
    hd = dim // num_heads
    scale = hd ** (-0.5)
    wqkv_t = p["wqkv"].T                      # (C, 3C)
    wqkv_t = wqkv_t.at[:, :dim].multiply(scale)
    bqkv = p["bqkv"].at[:, :dim].multiply(scale)
    wproj_h = p["wproj"].T.reshape(num_heads, hd, dim)
    return dict(
        g1=p["g1"], b1=p["b1"],
        wqkv_t=wqkv_t.astype(cdt), bqkv=bqkv,
        wproj_h=wproj_h.astype(cdt), bproj=p["bproj"],
        g2=p["g2"], b2=p["b2"],
        w1_t=p["w1"].T.astype(cdt), bb1=p["bb1"],
        w2_t=p["w2"].T.astype(cdt), bb2=p["bb2"],
        rpb_table=p["rpb_table"],
    )


# ----------------------------------------------------------------------------

if __name__ == "__main__":
    B, C, H_, W_ = 2, 32, 8, 8
    num_heads = 4
    window_size = 4
    shift_size = 2          # exercise the shifted-window (masked) path
    mlp_ratio = 4.0

    key = jax.random.PRNGKey(0)
    pkey, xkey = jax.random.split(key)
    params = init_params(pkey, C, num_heads, window_size, mlp_ratio)
    x = jax.random.normal(xkey, (B, C, H_, W_), jnp.float32)

    cdt = jnp.bfloat16                       # MXU-native matmul input dtype
    kp_bf16 = prepare_params(params, cdt, num_heads)
    kp_f32 = prepare_params(params, jnp.float32, num_heads)

    out = swin_forward(x, kp_bf16, num_heads=num_heads,
                       window_size=window_size, shift_size=shift_size,
                       use_pallas=True, cdt=cdt)
    out = jax.block_until_ready(out)
    assert out.shape == (B, C, H_, W_), out.shape

    # (a) reference with the same bf16 matmul rounding -> tight check
    ref_bf16 = swin_forward(x, kp_bf16, num_heads=num_heads,
                            window_size=window_size, shift_size=shift_size,
                            use_pallas=False, cdt=cdt)
    ref_bf16 = jax.block_until_ready(ref_bf16)
    err_tight = float(jnp.max(jnp.abs(out - ref_bf16)))
    assert err_tight < 5e-3, f"mismatch vs bf16-matched reference: {err_tight}"

    # (b) full-precision reference (exact PyTorch math in f32) -> bf16 budget
    ref_f32 = swin_forward(x, kp_f32, num_heads=num_heads,
                           window_size=window_size, shift_size=shift_size,
                           use_pallas=False, cdt=jnp.float32)
    ref_f32 = jax.block_until_ready(ref_f32)
    err_full = float(jnp.max(jnp.abs(out - ref_f32)))
    assert err_full < 2e-2, f"mismatch vs f32 reference: {err_full}"

    print("KERNEL_OK")
</pallas_src>

<mosaic_0001>
module attributes {stable_mosaic.version = 11 : i64} {
  func.func @_attn_kernel(%arg0: i32, %arg1: i32, %arg2: memref<4x16x32xf32, #tpu.memory_space<vmem>>, %arg3: memref<4x4x16x16xbf16, #tpu.memory_space<vmem>>, %arg4: memref<32x96xbf16, #tpu.memory_space<vmem>>, %arg5: memref<1x96xf32, #tpu.memory_space<vmem>>, %arg6: memref<4x8x32xbf16, #tpu.memory_space<vmem>>, %arg7: memref<1x32xf32, #tpu.memory_space<vmem>>, %arg8: memref<1x32xf32, #tpu.memory_space<vmem>>, %arg9: memref<1x32xf32, #tpu.memory_space<vmem>>, %arg10: memref<4x16x32xf32, #tpu.memory_space<vmem>>) attributes {dimension_semantics = [#tpu.dimension_semantics<parallel>, #tpu.dimension_semantics<parallel>], iteration_bounds = array<i64: 1, 2>, scalar_prefetch = 0 : i64, scratch_operands = 0 : i64, tpu.core_type = #tpu.core_type<tc>, window_params = [{transform_indices = @transform_0, window_bounds = array<i64: 4, 16, 32>}, {transform_indices = @transform_1, window_bounds = array<i64: 4, 4, 16, 16>}, {pipeline_mode = #tpu.pipeline_mode<synchronous>, transform_indices = @transform_2, window_bounds = array<i64: 32, 96>}, {pipeline_mode = #tpu.pipeline_mode<synchronous>, transform_indices = @transform_3, window_bounds = array<i64: 1, 96>}, {pipeline_mode = #tpu.pipeline_mode<synchronous>, transform_indices = @transform_4, window_bounds = array<i64: 4, 8, 32>}, {pipeline_mode = #tpu.pipeline_mode<synchronous>, transform_indices = @transform_5, window_bounds = array<i64: 1, 32>}, {pipeline_mode = #tpu.pipeline_mode<synchronous>, transform_indices = @transform_6, window_bounds = array<i64: 1, 32>}, {pipeline_mode = #tpu.pipeline_mode<synchronous>, transform_indices = @transform_7, window_bounds = array<i64: 1, 32>}, {transform_indices = @transform_8, window_bounds = array<i64: 4, 16, 32>}]} {
    %c0 = arith.constant 0 : index
    %c0_0 = arith.constant 0 : index
    %c0_1 = arith.constant 0 : index
    %0 = vector.load %arg2[%c0, %c0_0, %c0_1] : memref<4x16x32xf32, #tpu.memory_space<vmem>>, vector<4x16x32xf32>
    %1 = vector.shape_cast %0 : vector<4x16x32xf32> to vector<64x32xf32>
    %cst = arith.constant dense<0.000000e+00> : vector<64xf32>
    %2 = vector.multi_reduction <add>, %1, %cst [1] : vector<64x32xf32> to vector<64xf32>
    %3 = vector.shape_cast %2 : vector<64xf32> to vector<64x1xf32>
    %cst_2 = arith.constant 3.200000e+01 : f32
    %4 = vector.broadcast %cst_2 : f32 to vector<64x1xf32>
    %5 = arith.divf %3, %4 : vector<64x1xf32>
    %6 = vector.broadcast %5 : vector<64x1xf32> to vector<64x32xf32>
    %7 = arith.subf %1, %6 : vector<64x32xf32>
    %8 = arith.mulf %7, %7 : vector<64x32xf32>
    %cst_3 = arith.constant dense<0.000000e+00> : vector<64xf32>
    %9 = vector.multi_reduction <add>, %8, %cst_3 [1] : vector<64x32xf32> to vector<64xf32>
    %10 = vector.shape_cast %9 : vector<64xf32> to vector<64x1xf32>
    %cst_4 = arith.constant 3.200000e+01 : f32
    %11 = vector.broadcast %cst_4 : f32 to vector<64x1xf32>
    %12 = arith.divf %10, %11 : vector<64x1xf32>
    %13 = vector.broadcast %5 : vector<64x1xf32> to vector<64x32xf32>
    %14 = arith.subf %1, %13 : vector<64x32xf32>
    %cst_5 = arith.constant 9.99999974E-6 : f32
    %15 = vector.broadcast %cst_5 : f32 to vector<64x1xf32>
    %16 = arith.addf %12, %15 : vector<64x1xf32>
    %17 = math.rsqrt %16 : vector<64x1xf32>
    %18 = vector.broadcast %17 : vector<64x1xf32> to vector<64x32xf32>
    %19 = arith.mulf %14, %18 : vector<64x32xf32>
    %c0_6 = arith.constant 0 : index
    %c0_7 = arith.constant 0 : index
    %20 = vector.load %arg8[%c0_6, %c0_7] : memref<1x32xf32, #tpu.memory_space<vmem>>, vector<1x32xf32>
    %21 = vector.broadcast %20 : vector<1x32xf32> to vector<64x32xf32>
    %22 = arith.mulf %19, %21 : vector<64x32xf32>
    %c0_8 = arith.constant 0 : index
    %c0_9 = arith.constant 0 : index
    %23 = vector.load %arg9[%c0_8, %c0_9] : memref<1x32xf32, #tpu.memory_space<vmem>>, vector<1x32xf32>
    %24 = vector.broadcast %23 : vector<1x32xf32> to vector<64x32xf32>
    %25 = arith.addf %22, %24 : vector<64x32xf32>
    %26 = arith.truncf %25 : vector<64x32xf32> to vector<64x32xbf16>
    %c0_10 = arith.constant 0 : index
    %c0_11 = arith.constant 0 : index
    %27 = vector.load %arg4[%c0_10, %c0_11] : memref<32x96xbf16, #tpu.memory_space<vmem>>, vector<32x96xbf16>
    %cst_12 = arith.constant dense<0.000000e+00> : vector<64x96xf32>
    %28 = tpu.matmul %26, %27, %cst_12 {dimension_numbers = #tpu.dot_dimension_numbers<[1], [0], [0], [1], [0, 0, 1, 1], [], []>} : vector<64x32xbf16>, vector<32x96xbf16>, vector<64x96xf32> -> vector<64x96xf32>
    %c0_13 = arith.constant 0 : index
    %c0_14 = arith.constant 0 : index
    %29 = vector.load %arg5[%c0_13, %c0_14] : memref<1x96xf32, #tpu.memory_space<vmem>>, vector<1x96xf32>
    %30 = vector.broadcast %29 : vector<1x96xf32> to vector<64x96xf32>
    %31 = arith.addf %28, %30 : vector<64x96xf32>
    %32 = vector.shape_cast %31 : vector<64x96xf32> to vector<4x16x96xf32>
    %c0_15 = arith.constant 0 : index
    %c0_16 = arith.constant 0 : index
    %c0_17 = arith.constant 0 : index
    %33 = vector.load %arg6[%c0_15, %c0_16, %c0_17] : memref<4x8x32xbf16, #tpu.memory_space<vmem>>, vector<4x8x32xbf16>
    %c0_18 = arith.constant 0 : index
    %c0_19 = arith.constant 0 : index
    %c0_20 = arith.constant 0 : index
    %c0_21 = arith.constant 0 : index
    %34 = vector.load %arg3[%c0_18, %c0_19, %c0_20, %c0_21] : memref<4x4x16x16xbf16, #tpu.memory_space<vmem>>, vector<4x4x16x16xbf16>
    %cst_22 = arith.constant 0.000000e+00 : f32
    %35 = vector.broadcast %cst_22 : f32 to vector<64x32xf32>
    %36 = vector.extract_strided_slice %32 {offsets = [0, 0, 0], sizes = [4, 16, 8], strides = [1, 1, 1]} : vector<4x16x96xf32> to vector<4x16x8xf32>
    %37 = arith.truncf %36 : vector<4x16x8xf32> to vector<4x16x8xbf16>
    %38 = vector.extract_strided_slice %32 {offsets = [0, 0, 32], sizes = [4, 16, 8], strides = [1, 1, 1]} : vector<4x16x96xf32> to vector<4x16x8xf32>
    %39 = arith.truncf %38 : vector<4x16x8xf32> to vector<4x16x8xbf16>
    %40 = vector.extract_strided_slice %32 {offsets = [0, 0, 64], sizes = [4, 16, 8], strides = [1, 1, 1]} : vector<4x16x96xf32> to vector<4x16x8xf32>
    %41 = arith.truncf %40 : vector<4x16x8xf32> to vector<4x16x8xbf16>
    "tpu.trace_start"() <{level = 10 : i32, message = "wnd,wmd->wnm"}> : () -> ()
    %cst_23 = arith.constant dense<0.000000e+00> : vector<4x16x16xf32>
    %42 = tpu.matmul %37, %39, %cst_23 {dimension_numbers = #tpu.dot_dimension_numbers<[2], [2], [1], [1], [0, 0, 0, 1, 1, 1], [0], [0]>} : vector<4x16x8xbf16>, vector<4x16x8xbf16>, vector<4x16x16xf32> -> vector<4x16x16xf32>
    "tpu.trace_stop"() : () -> ()
    %43 = vector.extract_strided_slice %34 {offsets = [0, 0, 0, 0], sizes = [1, 4, 16, 16], strides = [1, 1, 1, 1]} : vector<4x4x16x16xbf16> to vector<1x4x16x16xbf16>
    %44 = vector.shape_cast %43 : vector<1x4x16x16xbf16> to vector<4x16x16xbf16>
    %45 = arith.extf %44 : vector<4x16x16xbf16> to vector<4x16x16xf32>
    %46 = arith.addf %42, %45 : vector<4x16x16xf32>
    %cst_24 = arith.constant dense<0xFF800000> : vector<4x16xf32>
    %47 = vector.multi_reduction <maximumf>, %46, %cst_24 [2] : vector<4x16x16xf32> to vector<4x16xf32>
    %48 = vector.shape_cast %47 : vector<4x16xf32> to vector<4x16x1xf32>
    %49 = vector.broadcast %48 : vector<4x16x1xf32> to vector<4x16x16xf32>
    %50 = arith.subf %46, %49 : vector<4x16x16xf32>
    %51 = math.exp %50 : vector<4x16x16xf32>
    %cst_25 = arith.constant dense<0.000000e+00> : vector<4x16xf32>
    %52 = vector.multi_reduction <add>, %51, %cst_25 [2] : vector<4x16x16xf32> to vector<4x16xf32>
    %53 = vector.shape_cast %52 : vector<4x16xf32> to vector<4x16x1xf32>
    %54 = tpu.reciprocal %53 {approx = true} : vector<4x16x1xf32> -> vector<4x16x1xf32>
    %55 = vector.broadcast %54 : vector<4x16x1xf32> to vector<4x16x16xf32>
    %56 = arith.mulf %51, %55 : vector<4x16x16xf32>
    %57 = arith.truncf %56 : vector<4x16x16xf32> to vector<4x16x16xbf16>
    "tpu.trace_start"() <{level = 10 : i32, message = "wnm,wmd->wnd"}> : () -> ()
    %cst_26 = arith.constant dense<0.000000e+00> : vector<4x16x8xf32>
    %58 = tpu.matmul %57, %41, %cst_26 {dimension_numbers = #tpu.dot_dimension_numbers<[2], [1], [1], [2], [0, 0, 0, 1, 1, 2], [0], [0]>} : vector<4x16x16xbf16>, vector<4x16x8xbf16>, vector<4x16x8xf32> -> vector<4x16x8xf32>
    "tpu.trace_stop"() : () -> ()
    %59 = vector.shape_cast %58 : vector<4x16x8xf32> to vector<64x8xf32>
    %60 = arith.truncf %59 : vector<64x8xf32> to vector<64x8xbf16>
    %61 = vector.extract_strided_slice %33 {offsets = [0, 0, 0], sizes = [1, 8, 32], strides = [1, 1, 1]} : vector<4x8x32xbf16> to vector<1x8x32xbf16>
    %62 = vector.shape_cast %61 : vector<1x8x32xbf16> to vector<8x32xbf16>
    %cst_27 = arith.constant dense<0.000000e+00> : vector<64x32xf32>
    %63 = tpu.matmul %60, %62, %cst_27 {dimension_numbers = #tpu.dot_dimension_numbers<[1], [0], [0], [1], [0, 0, 1, 1], [], []>} : vector<64x8xbf16>, vector<8x32xbf16>, vector<64x32xf32> -> vector<64x32xf32>
    %64 = arith.addf %35, %63 : vector<64x32xf32>
    %65 = vector.extract_strided_slice %32 {offsets = [0, 0, 8], sizes = [4, 16, 8], strides = [1, 1, 1]} : vector<4x16x96xf32> to vector<4x16x8xf32>
    %66 = arith.truncf %65 : vector<4x16x8xf32> to vector<4x16x8xbf16>
    %67 = vector.extract_strided_slice %32 {offsets = [0, 0, 40], sizes = [4, 16, 8], strides = [1, 1, 1]} : vector<4x16x96xf32> to vector<4x16x8xf32>
    %68 = arith.truncf %67 : vector<4x16x8xf32> to vector<4x16x8xbf16>
    %69 = vector.extract_strided_slice %32 {offsets = [0, 0, 72], sizes = [4, 16, 8], strides = [1, 1, 1]} : vector<4x16x96xf32> to vector<4x16x8xf32>
    %70 = arith.truncf %69 : vector<4x16x8xf32> to vector<4x16x8xbf16>
    "tpu.trace_start"() <{level = 10 : i32, message = "wnd,wmd->wnm"}> : () -> ()
    %cst_28 = arith.constant dense<0.000000e+00> : vector<4x16x16xf32>
    %71 = tpu.matmul %66, %68, %cst_28 {dimension_numbers = #tpu.dot_dimension_numbers<[2], [2], [1], [1], [0, 0, 0, 1, 1, 1], [0], [0]>} : vector<4x16x8xbf16>, vector<4x16x8xbf16>, vector<4x16x16xf32> -> vector<4x16x16xf32>
    "tpu.trace_stop"() : () -> ()
    %72 = vector.extract_strided_slice %34 {offsets = [1, 0, 0, 0], sizes = [1, 4, 16, 16], strides = [1, 1, 1, 1]} : vector<4x4x16x16xbf16> to vector<1x4x16x16xbf16>
    %73 = vector.shape_cast %72 : vector<1x4x16x16xbf16> to vector<4x16x16xbf16>
    %74 = arith.extf %73 : vector<4x16x16xbf16> to vector<4x16x16xf32>
    %75 = arith.addf %71, %74 : vector<4x16x16xf32>
    %cst_29 = arith.constant dense<0xFF800000> : vector<4x16xf32>
    %76 = vector.multi_reduction <maximumf>, %75, %cst_29 [2] : vector<4x16x16xf32> to vector<4x16xf32>
    %77 = vector.shape_cast %76 : vector<4x16xf32> to vector<4x16x1xf32>
    %78 = vector.broadcast %77 : vector<4x16x1xf32> to vector<4x16x16xf32>
    %79 = arith.subf %75, %78 : vector<4x16x16xf32>
    %80 = math.exp %79 : vector<4x16x16xf32>
    %cst_30 = arith.constant dense<0.000000e+00> : vector<4x16xf32>
    %81 = vector.multi_reduction <add>, %80, %cst_30 [2] : vector<4x16x16xf32> to vector<4x16xf32>
    %82 = vector.shape_cast %81 : vector<4x16xf32> to vector<4x16x1xf32>
    %83 = tpu.reciprocal %82 {approx = true} : vector<4x16x1xf32> -> vector<4x16x1xf32>
    %84 = vector.broadcast %83 : vector<4x16x1xf32> to vector<4x16x16xf32>
    %85 = arith.mulf %80, %84 : vector<4x16x16xf32>
    %86 = arith.truncf %85 : vector<4x16x16xf32> to vector<4x16x16xbf16>
    "tpu.trace_start"() <{level = 10 : i32, message = "wnm,wmd->wnd"}> : () -> ()
    %cst_31 = arith.constant dense<0.000000e+00> : vector<4x16x8xf32>
    %87 = tpu.matmul %86, %70, %cst_31 {dimension_numbers = #tpu.dot_dimension_numbers<[2], [1], [1], [2], [0, 0, 0, 1, 1, 2], [0], [0]>} : vector<4x16x16xbf16>, vector<4x16x8xbf16>, vector<4x16x8xf32> -> vector<4x16x8xf32>
    "tpu.trace_stop"() : () -> ()
    %88 = vector.shape_cast %87 : vector<4x16x8xf32> to vector<64x8xf32>
    %89 = arith.truncf %88 : vector<64x8xf32> to vector<64x8xbf16>
    %90 = vector.extract_strided_slice %33 {offsets = [1, 0, 0], sizes = [1, 8, 32], strides = [1, 1, 1]} : vector<4x8x32xbf16> to vector<1x8x32xbf16>
    %91 = vector.shape_cast %90 : vector<1x8x32xbf16> to vector<8x32xbf16>
    %cst_32 = arith.constant dense<0.000000e+00> : vector<64x32xf32>
    %92 = tpu.matmul %89, %91, %cst_32 {dimension_numbers = #tpu.dot_dimension_numbers<[1], [0], [0], [1], [0, 0, 1, 1], [], []>} : vector<64x8xbf16>, vector<8x32xbf16>, vector<64x32xf32> -> vector<64x32xf32>
    %93 = arith.addf %64, %92 : vector<64x32xf32>
    %94 = vector.extract_strided_slice %32 {offsets = [0, 0, 16], sizes = [4, 16, 8], strides = [1, 1, 1]} : vector<4x16x96xf32> to vector<4x16x8xf32>
    %95 = arith.truncf %94 : vector<4x16x8xf32> to vector<4x16x8xbf16>
    %96 = vector.extract_strided_slice %32 {offsets = [0, 0, 48], sizes = [4, 16, 8], strides = [1, 1, 1]} : vector<4x16x96xf32> to vector<4x16x8xf32>
    %97 = arith.truncf %96 : vector<4x16x8xf32> to vector<4x16x8xbf16>
    %98 = vector.extract_strided_slice %32 {offsets = [0, 0, 80], sizes = [4, 16, 8], strides = [1, 1, 1]} : vector<4x16x96xf32> to vector<4x16x8xf32>
    %99 = arith.truncf %98 : vector<4x16x8xf32> to vector<4x16x8xbf16>
    "tpu.trace_start"() <{level = 10 : i32, message = "wnd,wmd->wnm"}> : () -> ()
    %cst_33 = arith.constant dense<0.000000e+00> : vector<4x16x16xf32>
    %100 = tpu.matmul %95, %97, %cst_33 {dimension_numbers = #tpu.dot_dimension_numbers<[2], [2], [1], [1], [0, 0, 0, 1, 1, 1], [0], [0]>} : vector<4x16x8xbf16>, vector<4x16x8xbf16>, vector<4x16x16xf32> -> vector<4x16x16xf32>
    "tpu.trace_stop"() : () -> ()
    %101 = vector.extract_strided_slice %34 {offsets = [2, 0, 0, 0], sizes = [1, 4, 16, 16], strides = [1, 1, 1, 1]} : vector<4x4x16x16xbf16> to vector<1x4x16x16xbf16>
    %102 = vector.shape_cast %101 : vector<1x4x16x16xbf16> to vector<4x16x16xbf16>
    %103 = arith.extf %102 : vector<4x16x16xbf16> to vector<4x16x16xf32>
    %104 = arith.addf %100, %103 : vector<4x16x16xf32>
    %cst_34 = arith.constant dense<0xFF800000> : vector<4x16xf32>
    %105 = vector.multi_reduction <maximumf>, %104, %cst_34 [2] : vector<4x16x16xf32> to vector<4x16xf32>
    %106 = vector.shape_cast %105 : vector<4x16xf32> to vector<4x16x1xf32>
    %107 = vector.broadcast %106 : vector<4x16x1xf32> to vector<4x16x16xf32>
    %108 = arith.subf %104, %107 : vector<4x16x16xf32>
    %109 = math.exp %108 : vector<4x16x16xf32>
    %cst_35 = arith.constant dense<0.000000e+00> : vector<4x16xf32>
    %110 = vector.multi_reduction <add>, %109, %cst_35 [2] : vector<4x16x16xf32> to vector<4x16xf32>
    %111 = vector.shape_cast %110 : vector<4x16xf32> to vector<4x16x1xf32>
    %112 = tpu.reciprocal %111 {approx = true} : vector<4x16x1xf32> -> vector<4x16x1xf32>
    %113 = vector.broadcast %112 : vector<4x16x1xf32> to vector<4x16x16xf32>
    %114 = arith.mulf %109, %113 : vector<4x16x16xf32>
    %115 = arith.truncf %114 : vector<4x16x16xf32> to vector<4x16x16xbf16>
    "tpu.trace_start"() <{level = 10 : i32, message = "wnm,wmd->wnd"}> : () -> ()
    %cst_36 = arith.constant dense<0.000000e+00> : vector<4x16x8xf32>
    %116 = tpu.matmul %115, %99, %cst_36 {dimension_numbers = #tpu.dot_dimension_numbers<[2], [1], [1], [2], [0, 0, 0, 1, 1, 2], [0], [0]>} : vector<4x16x16xbf16>, vector<4x16x8xbf16>, vector<4x16x8xf32> -> vector<4x16x8xf32>
    "tpu.trace_stop"() : () -> ()
    %117 = vector.shape_cast %116 : vector<4x16x8xf32> to vector<64x8xf32>
    %118 = arith.truncf %117 : vector<64x8xf32> to vector<64x8xbf16>
    %119 = vector.extract_strided_slice %33 {offsets = [2, 0, 0], sizes = [1, 8, 32], strides = [1, 1, 1]} : vector<4x8x32xbf16> to vector<1x8x32xbf16>
    %120 = vector.shape_cast %119 : vector<1x8x32xbf16> to vector<8x32xbf16>
    %cst_37 = arith.constant dense<0.000000e+00> : vector<64x32xf32>
    %121 = tpu.matmul %118, %120, %cst_37 {dimension_numbers = #tpu.dot_dimension_numbers<[1], [0], [0], [1], [0, 0, 1, 1], [], []>} : vector<64x8xbf16>, vector<8x32xbf16>, vector<64x32xf32> -> vector<64x32xf32>
    %122 = arith.addf %93, %121 : vector<64x32xf32>
    %123 = vector.extract_strided_slice %32 {offsets = [0, 0, 24], sizes = [4, 16, 8], strides = [1, 1, 1]} : vector<4x16x96xf32> to vector<4x16x8xf32>
    %124 = arith.truncf %123 : vector<4x16x8xf32> to vector<4x16x8xbf16>
    %125 = vector.extract_strided_slice %32 {offsets = [0, 0, 56], sizes = [4, 16, 8], strides = [1, 1, 1]} : vector<4x16x96xf32> to vector<4x16x8xf32>
    %126 = arith.truncf %125 : vector<4x16x8xf32> to vector<4x16x8xbf16>
    %127 = vector.extract_strided_slice %32 {offsets = [0, 0, 88], sizes = [4, 16, 8], strides = [1, 1, 1]} : vector<4x16x96xf32> to vector<4x16x8xf32>
    %128 = arith.truncf %127 : vector<4x16x8xf32> to vector<4x16x8xbf16>
    "tpu.trace_start"() <{level = 10 : i32, message = "wnd,wmd->wnm"}> : () -> ()
    %cst_38 = arith.constant dense<0.000000e+00> : vector<4x16x16xf32>
    %129 = tpu.matmul %124, %126, %cst_38 {dimension_numbers = #tpu.dot_dimension_numbers<[2], [2], [1], [1], [0, 0, 0, 1, 1, 1], [0], [0]>} : vector<4x16x8xbf16>, vector<4x16x8xbf16>, vector<4x16x16xf32> -> vector<4x16x16xf32>
    "tpu.trace_stop"() : () -> ()
    %130 = vector.extract_strided_slice %34 {offsets = [3, 0, 0, 0], sizes = [1, 4, 16, 16], strides = [1, 1, 1, 1]} : vector<4x4x16x16xbf16> to vector<1x4x16x16xbf16>
    %131 = vector.shape_cast %130 : vector<1x4x16x16xbf16> to vector<4x16x16xbf16>
    %132 = arith.extf %131 : vector<4x16x16xbf16> to vector<4x16x16xf32>
    %133 = arith.addf %129, %132 : vector<4x16x16xf32>
    %cst_39 = arith.constant dense<0xFF800000> : vector<4x16xf32>
    %134 = vector.multi_reduction <maximumf>, %133, %cst_39 [2] : vector<4x16x16xf32> to vector<4x16xf32>
    %135 = vector.shape_cast %134 : vector<4x16xf32> to vector<4x16x1xf32>
    %136 = vector.broadcast %135 : vector<4x16x1xf32> to vector<4x16x16xf32>
    %137 = arith.subf %133, %136 : vector<4x16x16xf32>
    %138 = math.exp %137 : vector<4x16x16xf32>
    %cst_40 = arith.constant dense<0.000000e+00> : vector<4x16xf32>
    %139 = vector.multi_reduction <add>, %138, %cst_40 [2] : vector<4x16x16xf32> to vector<4x16xf32>
    %140 = vector.shape_cast %139 : vector<4x16xf32> to vector<4x16x1xf32>
    %141 = tpu.reciprocal %140 {approx = true} : vector<4x16x1xf32> -> vector<4x16x1xf32>
    %142 = vector.broadcast %141 : vector<4x16x1xf32> to vector<4x16x16xf32>
    %143 = arith.mulf %138, %142 : vector<4x16x16xf32>
    %144 = arith.truncf %143 : vector<4x16x16xf32> to vector<4x16x16xbf16>
    "tpu.trace_start"() <{level = 10 : i32, message = "wnm,wmd->wnd"}> : () -> ()
    %cst_41 = arith.constant dense<0.000000e+00> : vector<4x16x8xf32>
    %145 = tpu.matmul %144, %128, %cst_41 {dimension_numbers = #tpu.dot_dimension_numbers<[2], [1], [1], [2], [0, 0, 0, 1, 1, 2], [0], [0]>} : vector<4x16x16xbf16>, vector<4x16x8xbf16>, vector<4x16x8xf32> -> vector<4x16x8xf32>
    "tpu.trace_stop"() : () -> ()
    %146 = vector.shape_cast %145 : vector<4x16x8xf32> to vector<64x8xf32>
    %147 = arith.truncf %146 : vector<64x8xf32> to vector<64x8xbf16>
    %148 = vector.extract_strided_slice %33 {offsets = [3, 0, 0], sizes = [1, 8, 32], strides = [1, 1, 1]} : vector<4x8x32xbf16> to vector<1x8x32xbf16>
    %149 = vector.shape_cast %148 : vector<1x8x32xbf16> to vector<8x32xbf16>
    %cst_42 = arith.constant dense<0.000000e+00> : vector<64x32xf32>
    %150 = tpu.matmul %147, %149, %cst_42 {dimension_numbers = #tpu.dot_dimension_numbers<[1], [0], [0], [1], [0, 0, 1, 1], [], []>} : vector<64x8xbf16>, vector<8x32xbf16>, vector<64x32xf32> -> vector<64x32xf32>
    %151 = arith.addf %122, %150 : vector<64x32xf32>
    %c0_43 = arith.constant 0 : index
    %c0_44 = arith.constant 0 : index
    %152 = vector.load %arg7[%c0_43, %c0_44] : memref<1x32xf32, #tpu.memory_space<vmem>>, vector<1x32xf32>
    %153 = vector.broadcast %152 : vector<1x32xf32> to vector<64x32xf32>
    %154 = arith.addf %151, %153 : vector<64x32xf32>
    %155 = vector.shape_cast %154 : vector<64x32xf32> to vector<4x16x32xf32>
    %c0_45 = arith.constant 0 : index
    %c0_46 = arith.constant 0 : index
    %c0_47 = arith.constant 0 : index
    %156 = vector.load %arg10[%c0_45, %c0_46, %c0_47] : memref<4x16x32xf32, #tpu.memory_space<vmem>>, vector<4x16x32xf32>
    tpu.vector_store %arg10[%c0_45, %c0_46, %c0_47], %155 {strides = array<i32>} : memref<4x16x32xf32, #tpu.memory_space<vmem>>, vector<4x16x32xf32>,
    return
  }
  func.func @transform_0(%arg0: i32, %arg1: i32) -> (i32, i32, i32) {
    %c1_i32 = arith.constant 1 : i32
    %0 = arith.muli %arg1, %c1_i32 : i32
    %1 = arith.addi %0, %arg0 : i32
    %c0_i32 = arith.constant 0 : i32
    %c0_i32_0 = arith.constant 0 : i32
    %c0_i32_1 = arith.constant 0 : i32
    return %1, %c0_i32, %c0_i32_0 : i32, i32, i32
  }
  func.func @transform_1(%arg0: i32, %arg1: i32) -> (i32, i32, i32, i32) {
    %c0_i32 = arith.constant 0 : i32
    %c0_i32_0 = arith.constant 0 : i32
    %c0_i32_1 = arith.constant 0 : i32
    %c0_i32_2 = arith.constant 0 : i32
    return %c0_i32, %arg0, %c0_i32_0, %c0_i32_1 : i32, i32, i32, i32
  }
  func.func @transform_2(%arg0: i32, %arg1: i32) -> (i32, i32) {
    %c0_i32 = arith.constant 0 : i32
    %c0_i32_0 = arith.constant 0 : i32
    %c0_i32_1 = arith.constant 0 : i32
    return %c0_i32, %c0_i32_0 : i32, i32
  }
  func.func @transform_3(%arg0: i32, %arg1: i32) -> (i32, i32) {
    %c0_i32 = arith.constant 0 : i32
    %c0_i32_0 = arith.constant 0 : i32
    %c0_i32_1 = arith.constant 0 : i32
    return %c0_i32, %c0_i32_0 : i32, i32
  }
  func.func @transform_4(%arg0: i32, %arg1: i32) -> (i32, i32, i32) {
    %c0_i32 = arith.constant 0 : i32
    %c0_i32_0 = arith.constant 0 : i32
    %c0_i32_1 = arith.constant 0 : i32
    %c0_i32_2 = arith.constant 0 : i32
    return %c0_i32, %c0_i32_0, %c0_i32_1 : i32, i32, i32
  }
  func.func @transform_5(%arg0: i32, %arg1: i32) -> (i32, i32) {
    %c0_i32 = arith.constant 0 : i32
    %c0_i32_0 = arith.constant 0 : i32
    %c0_i32_1 = arith.constant 0 : i32
    return %c0_i32, %c0_i32_0 : i32, i32
  }
  func.func @transform_6(%arg0: i32, %arg1: i32) -> (i32, i32) {
    %c0_i32 = arith.constant 0 : i32
    %c0_i32_0 = arith.constant 0 : i32
    %c0_i32_1 = arith.constant 0 : i32
    return %c0_i32, %c0_i32_0 : i32, i32
  }
  func.func @transform_7(%arg0: i32, %arg1: i32) -> (i32, i32) {
    %c0_i32 = arith.constant 0 : i32
    %c0_i32_0 = arith.constant 0 : i32
    %c0_i32_1 = arith.constant 0 : i32
    return %c0_i32, %c0_i32_0 : i32, i32
  }
  func.func @transform_8(%arg0: i32, %arg1: i32) -> (i32, i32, i32) {
    %c1_i32 = arith.constant 1 : i32
    %0 = arith.muli %arg1, %c1_i32 : i32
    %1 = arith.addi %0, %arg0 : i32
    %c0_i32 = arith.constant 0 : i32
    %c0_i32_0 = arith.constant 0 : i32
    %c0_i32_1 = arith.constant 0 : i32
    return %1, %c0_i32, %c0_i32_0 : i32, i32, i32
  }
}

</mosaic_0001>

<bundles_post_ra>
// kernel: tpu_custom_call.1
= control target key start
LH: loop header
LB: loop body
LE: loop exit
PB: predicated region body
PF: predicated region fallthrough
CT: control target
= control target key end

     0   :  { %s3834_s0 = inlined_call_operand.hbm [shape: f32[8,16,32], index: 0, kind: input, shape index: {}]   ;;  %s3835_s1 = inlined_call_operand.hbm [shape: bf16[4,4,16,16], index: 1, kind: input, shape index: {}]   ;;  %s3836_s2 = inlined_call_operand.hbm [shape: bf16[32,96], index: 2, kind: input, shape index: {}]   ;;  %s3837_s3 = inlined_call_operand.vmem [shape: f32[1,96], index: 3, kind: input, shape index: {}]   ;;  %s3838_s4 = inlined_call_operand.hbm [shape: bf16[4,8,32], index: 4, kind: input, shape index: {}]   ;;  %s3839_s5 = inlined_call_operand.vmem [shape: f32[1,32], index: 5, kind: input, shape index: {}]   ;;  %s3840_s6 = inlined_call_operand.vmem [shape: f32[1,32], index: 6, kind: input, shape index: {}]   ;;  %s3841_s7 = inlined_call_operand.vmem [shape: f32[1,32], index: 7, kind: input, shape index: {}]   ;;  %s3842_s8 = inlined_call_operand.hbm [shape: f32[8,16,32], index: 8, kind: output, shape index: {}]  }
   0x1   :  { %3847 = sst [smem:[#allocation18_spill]] %s3835_s1 }
   0x2   :  { %3848 = sst [smem:[#allocation19_spill]] %s3836_s2 }
   0x3   :  { %3849 = sst [smem:[#allocation20_spill]] %s3838_s4 }
   0x4   :  { %13 = vsyncpa [#allocation3], 0 }
   0x5   :  { %15 = vsyncpa [#allocation3 + $0x1], 0 }
   0x6   :  { %16 = vsyncpa [#allocation6], 0 }
   0x7   :  { %17 = vsyncpa [#allocation9], 0 }
   0x8   :  { %18 = vsyncpa [#allocation4], 0 }
   0x9   :  { %20 = vsyncpa [#allocation4 + $0x1], 0  ;;  %s3016_s27 = smov 0   ;;  %s3018_s28 = smov 0  }
   0xa   :  { %s3020_s29 = smov 0   ;;  %s3022_s30 = smov 0  }
   0xb   :  { %s3024_s9 = smov 0   ;;  %s3026_s10 = smov 0  }
   0xc LB: > { %3850 = sst [smem:[#allocation15_spill]] %s2948_s10  ;;  %s2309_s11 = sadd.s32 4294967295, %s2948_s10   ;;  %s2948_s10 = sphi %s3026_s10, %s26_s10   ;;  %s2944_s9 = sphi %s3024_s9, %s3871_s9   ;;  %s2940_s30 = sphi %s3022_s30, %s3870_s30   ;;  %s2936_s29 = sphi %s3020_s29, %s3869_s29   ;;  %s2932_s28 = sphi %s3018_s28, %s3868_s28   ;;  %s2928_s27 = sphi %s3016_s27, %s3867_s27  }
   0xd   : > { %s2310_s12 = sadd.s32 4294967294, %s2948_s10   ;;  %p60_p0 = scmp.ne.s32.totalorder %s2932_s28, %s2928_s27 }
   0xe   : > { %p3050_p1 = scmp.eq.s32.totalorder %s2309_s11, 0  ;;  %p3054_p2 = scmp.eq.s32.totalorder %s2309_s11, 1 }
   0xf   : > { %p244_p3 = scmp.eq.s32.totalorder %s2310_s12, 1  ;;  %p2311_p5 = scmp.ge.s32.totalorder %s2948_s10, 1 }
  0x10   : > { %p3060_p4 = por %p3050_p1, %p60_p0  ;;  %p251_p7 = scmp.lt.s32.totalorder %s2948_s10, 3 }
  0x11   : > { %p3065_p6 = por %p244_p3, %p60_p0  ;;  %s3856_s1 = sld [smem:[#allocation18_spill]] }
  0x12   : > { %p3073_p8 = pnand %p2311_p5, %p251_p7  ;;  %s2950_s21 = smov [#allocation5]  }
  0x13   : > { %s3854_s16 = scalar_select %p3065_p6, 1, 0 }
  0x14   : > { %p2493_p9 = pneg %p3073_p8  ;;  %s268_s22 = sshll.u32 %s2950_s21, 4  ;;  %s269_s22 = int_to_ptr.vmem [resolvable:$true] %s268_s22 }
  0x15   : > { %3855 = sst [smem:[#allocation16_spill]] %s3854_s16  ;;  %p2315_p11 = scmp.ge.s32.totalorder %s2948_s10, 2 }
  0x16   : > { %p3081_p10 = pnand %p2493_p9, %p3050_p1  ;;  %s3859_s2 = sld [smem:[#allocation19_spill]] }
  0x17   : > { %s266_s19 = sshll.u32 %s3856_s1, 4  ;;  %s2951_s11 = smov 64   ;;  %s267_s19 = int_to_ptr.hbm [resolvable:$true] %s266_s19 }
  0x18   : > { %s2952_s12 = smov 4   ;;  %s2953_s17 = smov [#allocation7]  }
  0x19   : > { %2496 = dma.hbm_to_vmem [thread:$0]  (!%p3081_p10), %s267_s19, 2048, %s269_s22, [#allocation6], %s2951_s11, %s2951_s11, %s2952_s12  }
  0x1a   : > { %s282_s18 = sshll.u32 %s2953_s17, 4  ;;  %s3860_s4 = sld [smem:[#allocation20_spill]]  ;;  %s283_s18 = int_to_ptr.vmem [resolvable:$true] %s282_s18 }
  0x1b   : > { %s2954_s24 = smov [#allocation8]   ;;  %s35_s19 = sadd.s32 1, %s2944_s9 }
  0x1c   : > { %s280_s26 = sshll.u32 %s3859_s2, 4  ;;  %s299_s25 = sshll.u32 %s2954_s24, 4  ;;  %s281_s26 = int_to_ptr.hbm [resolvable:$true] %s280_s26  ;;  %s300_s25 = int_to_ptr.vmem [resolvable:$true] %s299_s25 }
  0x1d   : > { %2499 = dma.hbm_to_vmem [thread:$0]  (!%p3081_p10), %s281_s26, 256, %s283_s18, [#allocation6], %s2951_s11, %s2951_s11, %s2952_s12  }
  0x1e   : > { %p36_p12 = scmp.ge.s32.totalorder %s35_s19, 2  ;;  %s47_s22 = sadd.s32 1, %s2936_s29 }
  0x1f   : > { %p54_p13 = scmp.ne.s32.totalorder %s2936_s29, %s2932_s28  ;;  %p55_p0 = scmp.eq.s32.totalorder %s2948_s10, 0 }
  0x20   : > { %s297_s16 = sshll.u32 %s3860_s4, 4  ;;  %s3873_s19 = smov (%p36_p12, %s35_s19), 0  ;;  %s298_s16 = int_to_ptr.hbm [resolvable:$true] %s297_s16 }
  0x21   : > { %2502 = dma.hbm_to_vmem [thread:$0]  (!%p3081_p10), %s298_s16, 256, %s300_s25, [#allocation9], %s2951_s11, %s2951_s11, %s2952_s12  }
  0x22   : > { %3861 = sst [smem:[#allocation17_spill]] %s3873_s19  ;;  %p3105_p3 = por %p55_p0, %p54_p13 }
  0x23   : > { %p3111_p5 = por %p3054_p2, %p54_p13  ;;  %s44_s23 = ssub.s32 %s2944_s9, %s3873_s19 }
  0x24   : > { %p2514_p7 = scmp.lt.s32.totalorder %s2948_s10, 2  ;;  %p45_p9 = scmp.eq.s32.totalorder %s44_s23, 0 }
  0x25   : > { %s322_s16 = sand.u32 1, %s2936_s29   ;;  %s2393_s17 = sshll.u32 %s2944_s9, 6 }
  0x26   : > { %s2316_s11 = sshll.u32 %s322_s16, 6  ;;  %s333_s24 = scalar_lea.hbm %s3834_s0, %s2393_s17 }
  0x27   : > { %s3120_s12 = scalar_select %p45_p9, %s2936_s29, %s47_s22  }
  0x28   : > { %s326_s25 = scalar_lea.vmem [#allocation2], %s2316_s11  ;;  %s334_s14 = sshll.u32 %s333_s24, 4  ;;  %s335_s14 = int_to_ptr.hbm [resolvable:$true] %s334_s14 }
  0x29   : > { %s336_s2 = sshll.u32 %s326_s25, 4  ;;  %p2504_p2 = pnand %p2514_p7, %p3105_p3  ;;  %s337_s2 = int_to_ptr.vmem [resolvable:$true] %s336_s2 }
  0x2a   : > { %s323_s4 = scalar_lea.sflag [#allocation3], %s322_s16  ;;  %s2955_s19 = smov 128  }
  0x2b   : > { %s2956_s10 = smov 8   ;;  %348 = sbr.rel (%p3073_p8) target bundleno = 2880 (0xb40), region = 52 }
  0x2c   : > { %2506 = dma.hbm_to_vmem [thread:$0]  (!%p2504_p2), %s335_s14, 1024, %s337_s2, %s323_s4, %s2955_s19, %s2955_s19, %s2956_s10  }
  0x2d   : > { %s3131_s22 = sand.u32 (!%p3073_p8), 1, %s2932_s28  }
  0x2e   : > { %s2321_s23 = sshll.u32 (!%p3073_p8), %s3131_s22, 6  ;;  %s351_s11 = scalar_lea.sflag (!%p3073_p8), [#allocation3], %s3131_s22 }
  0x2f   : > { %s3137_s17 = scalar_lea.vmem (!%p3073_p8), [#allocation2], %s2321_s23 }
  0x30   : > { %2911 = dma.done.wait (%p3060_p4), %s351_s11, 1024  }
  0x31   : > { %2913 = vsyncadd (%p3060_p4), %s351_s11, 4294966272 }
  0x32   : > { %2915 = dma.done.wait (%p3050_p1), [#allocation6], 2304  }
  0x33   : > { %2917 = vsyncadd (%p3050_p1), [#allocation6], 4294964992 }
  0x34   : > { %2919 = dma.done.wait (%p3050_p1), [#allocation9], 256  }
  0x35   : > { %2921 = vsyncadd (%p3050_p1), [#allocation9], 4294967040  ;;  %vm417_vm0 = vcmask 261120   ;;  %v413_v0 = vld [vmem:[%s3137_s17 + $0x20] sm:$0xff]  ;;  %v411_v1 = vld [vmem:[%s3137_s17 + $0x10] sm:$0xff]  ;;  %v2957_v14 = vmov 32.0  }
  0x36   : > { %v409_v2 = vld [vmem:[%s3137_s17] sm:$0xff]  ;;  %v430_v3 = vsel %vm417_vm0, %v413_v0, 0.0  ;;  %v424_v4 = vsel %vm417_vm0, %v411_v1, 0.0  ;;  %v414_v6 = vld [vmem:[%s3137_s17 + $0x28] sm:$0xff]  ;;  %v412_v7 = vld [vmem:[%s3137_s17 + $0x18] sm:$0xff]  ;;  %2592 = vrcp.f32 %v2957_v14  ;;  %s2958_s19 = smov 96  }
  0x37   : > { %v418_v5 = vsel %vm417_vm0, %v409_v2, 0.0  ;;  %431 = vadd.xlane.f32.xlu2 %v430_v3  ;;  %425 = vadd.xlane.f32.xlu1 %v424_v4  ;;  %v410_v8 = vld [vmem:[%s3137_s17 + $0x8] sm:$0xff]  ;;  %v433_v9 = vsel %vm417_vm0, %v414_v6, 0.0  ;;  %v427_v10 = vsel %vm417_vm0, %v412_v7, 0.0  ;;  %v415_v12 = vld [vmem:[%s3137_s17 + $0x30] sm:$0xff]  ;;  %v416_v36 = vld [vmem:[%s3137_s17 + $0x38] sm:$0xff] }
  0x38   : > { %419 = vadd.xlane.f32.xlu0 %v418_v5  ;;  %v421_v11 = vsel %vm417_vm0, %v410_v8, 0.0  ;;  %v436_v13 = vsel %vm417_vm0, %v415_v12, 0.0  ;;  %v439_v41 = vsel %vm417_vm0, %v416_v36, 0.0  ;;  %v2395_v58 = vld [vmem:[#allocation7 + $0x8] sm:$0xff]  ;;  %v2394_v62 = vld [vmem:[#allocation7] sm:$0xff]  ;;  %s2959_s1 = smov 64  }
  0x39   : > { %667 = vmatpush.bf16.msra.mxu0 %v2395_v58  ;;  %s2960_s16 = smov 88   ;;  %s2961_s18 = smov 120  }
  0x3a   : > { %s2962_s21 = smov 56   ;;  %s2963_s24 = smov 80  }
  0x3b   : > { %s2964_s25 = smov 112   ;;  %s2965_s14 = smov 48  }
  0x3c   : > { %v2593_v15 = vpop.eup %2592  ;;  %s2966_s11 = smov 72   ;;  %s2967_s17 = smov 104  }
  0x3d   : > { %v443_v16 = vmul.f32 32.0, %v2593_v15  ;;  %vm447_vm1 = vweird.f32 %v2593_v15  ;;  %668 = vmatpush.bf16.msra.mxu0 %v2394_v62  ;;  %s2968_s2 = smov 40   ;;  %s3761_s13 = scalar_lea.vmem [#allocation10], %s2321_s23 }
  0x3e   : > { %s2397_s23 = sshll.u32 %s2940_s30, 6  ;;  %s2178_s30 = scalar_lea.sflag [#allocation4], %s3131_s22 }
  0x3f   : > { %434 = vadd.xlane.f32.xlu2 %v433_v9  ;;  %428 = vadd.xlane.f32.xlu1 %v427_v10  ;;  %v444_v17 = vsub.f32 1.0, %v443_v16 }
  0x40   : > { %422 = vadd.xlane.f32.xlu0 %v421_v11 }
  0x41   : > { %v445_v18 = vmul.f32 %v2593_v15, %v444_v17 }
  0x43   : > { %v446_v19 = vadd.f32 %v2593_v15, %v445_v18 }
  0x45   : > { %v3165_v20 = vsel %vm447_vm1, %v2593_v15, %v446_v19 }
  0x47   : > { %437 = vadd.xlane.f32.xlu2 %v436_v13 }
  0xaa   : > { %v432_v21 = vpop.xlane.xlu2 %431  ;;  %v426_v22 = vpop.xlane.xlu1 %425 }
  0xab   : > { %v420_v23 = vpop.xlane.xlu0 %419  ;;  %v453_v32 = vmul.f32 %v3165_v20, %v432_v21  ;;  %v451_v33 = vmul.f32 %v3165_v20, %v426_v22 }
  0xac   : > { %v449_v24 = vmul.f32 %v3165_v20, %v420_v23 }
  0xad   : > { %v3184_v39 = vsub.f32 %v413_v0, %v453_v32  ;;  %v3186_v40 = vsub.f32 %v411_v1, %v451_v33 }
  0xae   : > { %v3168_v25 = vsub.f32 %v409_v2, %v449_v24 }
  0xaf   : > { %v469_v48 = vmul.f32 %v3184_v39, %v3184_v39  ;;  %v467_v49 = vmul.f32 %v3186_v40, %v3186_v40 }
  0xb0   : > { %v465_v26 = vmul.f32 %v3168_v25, %v3168_v25 }
  0xb1   : > { %v485_v53 = vsel %vm417_vm0, %v469_v48, 0.0  ;;  %v479_v54 = vsel %vm417_vm0, %v467_v49, 0.0 }
  0xb2   : > { %v435_v27 = vpop.xlane.xlu2 %434  ;;  %v429_v28 = vpop.xlane.xlu1 %428  ;;  %v473_v29 = vsel %vm417_vm0, %v465_v26, 0.0 }
  0xb3   : > { %v452_v30 = vmul.f32 %v3165_v20, %v429_v28  ;;  %474 = vadd.xlane.f32.xlu0 %v473_v29  ;;  %v423_v31 = vpop.xlane.xlu0 %422  ;;  %v454_v47 = vmul.f32 %v3165_v20, %v435_v27 }
  0xb4   : > { %v450_v34 = vmul.f32 %v3165_v20, %v423_v31 }
  0xb5   : > { %v3177_v35 = vsub.f32 %v412_v7, %v452_v30  ;;  %v3203_v52 = vsub.f32 %v414_v6, %v454_v47 }
  0xb6   : > { %v3180_v37 = vsub.f32 %v410_v8, %v450_v34 }
  0xb7   : > { %v468_v38 = vmul.f32 %v3177_v35, %v3177_v35  ;;  %v470_v56 = vmul.f32 %v3203_v52, %v3203_v52 }
  0xb8   : > { %v466_v42 = vmul.f32 %v3180_v37, %v3180_v37 }
  0xb9   : > { %v482_v43 = vsel %vm417_vm0, %v468_v38, 0.0  ;;  %v488_v57 = vsel %vm417_vm0, %v470_v56, 0.0 }
  0xba   : > { %v438_v44 = vpop.xlane.xlu2 %437  ;;  %483 = vadd.xlane.f32.xlu2 %v482_v43  ;;  %v476_v45 = vsel %vm417_vm0, %v466_v42, 0.0 }
  0xbb   : > { %v455_v46 = vmul.f32 %v3165_v20, %v438_v44  ;;  %440 = vadd.xlane.f32.xlu0 %v439_v41  ;;  %477 = vadd.xlane.f32.xlu1 %v476_v45  ;;  %v3238_v44 = vld [vmem:[%s3840_s6] ss:$0 sm:$0xff] }
  0xbd   : > { %v3199_v50 = vsub.f32 %v415_v12, %v455_v46 }
  0xbf   : > { %v471_v51 = vmul.f32 %v3199_v50, %v3199_v50 }
  0xc1   : > { %v491_v55 = vsel %vm417_vm0, %v471_v51, 0.0 }
  0xc2   : > { %492 = vadd.xlane.f32.xlu2 %v491_v55 }
  0xc3   : > { %486 = vadd.xlane.f32.xlu0 %v485_v53  ;;  %480 = vadd.xlane.f32.xlu1 %v479_v54 }
  0xcb   : > { %489 = vadd.xlane.f32.xlu1 %v488_v57 }
 0x126   : > { %v475_v59 = vpop.xlane.xlu0 %474 }
 0x127   : > { %v497_v60 = vmul.f32 %v475_v59, %v3165_v20 }
 0x129   : > { %v505_v61 = vadd.f32 1e-05, %v497_v60 }
 0x12b   : > { %2594 = vrsqrt.f32 %v505_v61  ;;  %vm519_vm3 = vweird.f32 %v505_v61 }
 0x12d   : > { %v484_v63 = vpop.xlane.xlu2 %483 }
 0x12e   : > { %v500_v0 = vmul.f32 %v484_v63, %v3165_v20  ;;  %v478_v1 = vpop.xlane.xlu1 %477  ;;  %v441_v2 = vpop.xlane.xlu0 %440 }
 0x12f   : > { %v498_v3 = vmul.f32 %v478_v1, %v3165_v20  ;;  %v456_v4 = vmul.f32 %v3165_v20, %v441_v2 }
 0x130   : > { %v3215_v5 = vadd.f32 1e-05, %v500_v0 }
 0x131   : > { %v2595_v6 = vpop.eup %2594  ;;  %v506_v7 = vadd.f32 1e-05, %v498_v3  ;;  %v3217_v8 = vsub.f32 %v416_v36, %v456_v4 }
 0x132   : > { %v514_v9 = vmul.f32 %v2595_v6, %v505_v61  ;;  %2596 = vrsqrt.f32 %v3215_v5  ;;  %vm520_vm2 = vweird.f32 %v2595_v6  ;;  %vm549_vm10 = vweird.f32 %v3215_v5 }
 0x133   : > { %2598 = vrsqrt.f32 %v506_v7  ;;  %v472_v10 = vmul.f32 %v3217_v8, %v3217_v8  ;;  %vm521_vm4 = vmor %vm519_vm3, %vm520_vm2  ;;  %vm529_vm5 = vweird.f32 %v506_v7 }
 0x134   : > { %v515_v11 = vmul.f32 %v2595_v6, %v514_v9 }
 0x135   : > { %v494_v12 = vsel %vm417_vm0, %v472_v10, 0.0 }
 0x136   : > { %v516_v13 = vmul.f32 0.5, %v515_v11  ;;  %v481_v14 = vpop.xlane.xlu1 %480  ;;  %495 = vadd.xlane.f32.xlu0 %v494_v12  ;;  %v487_v16 = vpop.xlane.xlu0 %486 }
 0x137   : > { %v499_v15 = vmul.f32 %v481_v14, %v3165_v20  ;;  %v501_v23 = vmul.f32 %v487_v16, %v3165_v20 }
 0x138   : > { %v3224_v17 = vpop.eup %2596  ;;  %v517_v18 = vsub.f32 1.5, %v516_v13 }
 0x139   : > { %v2599_v19 = vpop.eup %2598  ;;  %v507_v21 = vadd.f32 1e-05, %v499_v15  ;;  %v544_v26 = vmul.f32 %v3224_v17, %v3215_v5  ;;  %v3229_v29 = vadd.f32 1e-05, %v501_v23  ;;  %vm550_vm11 = vweird.f32 %v3224_v17 }
 0x13a   : > { %v524_v22 = vmul.f32 %v2599_v19, %v506_v7  ;;  %v518_v24 = vmul.f32 %v2595_v6, %v517_v18  ;;  %vm530_vm6 = vweird.f32 %v2599_v19  ;;  %vm551_vm13 = vmor %vm549_vm10, %vm550_vm11  ;;  %vm749_vm11 = vcmask 64512  }
 0x13b   : > { %2600 = vrsqrt.f32 %v507_v21  ;;  %v545_v32 = vmul.f32 %v3224_v17, %v544_v26  ;;  %vm531_vm7 = vmor %vm529_vm5, %vm530_vm6  ;;  %vm539_vm8 = vweird.f32 %v507_v21  ;;  %vm559_vm1 = vweird.f32 %v3229_v29 }
 0x13c   : > { %v525_v27 = vmul.f32 %v2599_v19, %v524_v22  ;;  %v522_v31 = vsel %vm521_vm4, %v2595_v6, %v518_v24  ;;  %2602 = vrsqrt.f32 %v3229_v29 }
 0x13d   : > { %v593_v41 = vmul.f32 %v522_v31, %v3168_v25  ;;  %v546_v45 = vmul.f32 0.5, %v545_v32  ;;  %v3245_v25 = vld [vmem:[%s3841_s7] ss:$0 sm:$0xff] }
 0x13e   : > { %v526_v28 = vmul.f32 0.5, %v525_v27  ;;  %v490_v30 = vpop.xlane.xlu1 %489  ;;  %v493_v27 = vpop.xlane.xlu2 %492 }
 0x13f   : > { %v502_v33 = vmul.f32 %v490_v30, %v3165_v20  ;;  %v605_v51 = vmul.f32 %v3238_v44, %v593_v41  ;;  %v547_v53 = vsub.f32 1.5, %v546_v45 }
 0x140   : > { %v527_v34 = vsub.f32 1.5, %v526_v28  ;;  %v503_v28 = vmul.f32 %v493_v27, %v3165_v20 }
 0x141   : > { %v2601_v36 = vpop.eup %2600  ;;  %v510_v38 = vadd.f32 1e-05, %v502_v33  ;;  %v617_v59 = vadd.f32 %v3245_v25, %v605_v51  ;;  %v548_v60 = vmul.f32 %v3224_v17, %v547_v53 }
 0x142   : > { %v528_v42 = vmul.f32 %v2599_v19, %v527_v34  ;;  %v534_v43 = vmul.f32 %v2601_v36, %v507_v21  ;;  %vm540_vm9 = vweird.f32 %v2601_v36  ;;  %v2603_v55 = vpop.eup %2602 }
 0x143   : > { %2604 = vrsqrt.f32 %v510_v38  ;;  %vm541_vm12 = vmor %vm539_vm8, %vm540_vm9  ;;  %v554_v61 = vmul.f32 %v2603_v55, %v3229_v29  ;;  %v552_v2 = vsel %vm551_vm13, %v3224_v17, %v548_v60  ;;  %vm569_vm14 = vweird.f32 %v510_v38 }
 0x144   : > { %v532_v46 = vsel %vm531_vm7, %v2599_v19, %v528_v42  ;;  %v535_v47 = vmul.f32 %v2601_v36, %v534_v43  ;;  %v596_v6 = vmul.f32 %v552_v2, %v3177_v35  ;;  %vm560_vm2 = vweird.f32 %v2603_v55 }
 0x145   : > { %v594_v48 = vmul.f32 %v532_v46, %v3180_v37  ;;  %v555_v3 = vmul.f32 %v2603_v55, %v554_v61  ;;  %vm561_vm4 = vmor %vm559_vm1, %vm560_vm2  ;;  %v511_v29 = vadd.f32 1e-05, %v503_v28  ;;  %vm1368_vm13 = vcmask 1043456  }
 0x146   : > { %v536_v49 = vmul.f32 0.5, %v535_v47  ;;  %v608_v11 = vmul.f32 %v3238_v44, %v596_v6 }
 0x147   : > { %v606_v54 = vmul.f32 %v3238_v44, %v594_v48  ;;  %v556_v7 = vmul.f32 0.5, %v555_v3  ;;  %2606 = vrsqrt.f32 %v511_v29  ;;  %vm579_vm5 = vweird.f32 %v511_v29 }
 0x148   : > { %v537_v56 = vsub.f32 1.5, %v536_v49 }
 0x149   : > { %v618_v37 = vadd.f32 %v3245_v25, %v606_v54  ;;  %v2605_v57 = vpop.eup %2604  ;;  %v557_v12 = vsub.f32 1.5, %v556_v7 }
 0x14a   : > { %v538_v58 = vmul.f32 %v2601_v36, %v537_v56  ;;  %v564_v62 = vmul.f32 %v2605_v57, %v510_v38  ;;  %vm570_vm15 = vweird.f32 %v2605_v57 }
 0x14b   : > { %v625_v63 = vpack.c.bf16 %v618_v37, %v617_v59  ;;  %vm571_vm3 = vmor %vm569_vm14, %vm570_vm15  ;;  %v558_v15 = vmul.f32 %v2603_v55, %v557_v12 }
 0x14c   : > { %v542_v0 = vsel %vm541_vm12, %v2601_v36, %v538_v58  ;;  %v565_v1 = vmul.f32 %v2605_v57, %v564_v62  ;;  %vm851_vm12 = vcmask 130048  }
 0x14d   : > { %2334 = vmatmul.msk.bf16.vlgmr.msra.gmra.mxu0 %vm417_vm0, %v625_v63  ;;  %v595_v4 = vmul.f32 %v542_v0, %v3186_v40  ;;  %v620_v40 = vadd.f32 %v3245_v25, %v608_v11  ;;  %v562_v17 = vsel %vm561_vm4, %v2603_v55, %v558_v15  ;;  %v2607_v30 = vpop.eup %2606 }
 0x14e   : > { %v566_v5 = vmul.f32 0.5, %v565_v1  ;;  %v597_v19 = vmul.f32 %v562_v17, %v3184_v39  ;;  %vm580_vm6 = vweird.f32 %v2607_v30 }
 0x14f   : > { %v607_v9 = vmul.f32 %v3238_v44, %v595_v4  ;;  %vm581_vm7 = vmor %vm579_vm5, %vm580_vm6 }
 0x150   : > { %v567_v10 = vsub.f32 1.5, %v566_v5  ;;  %v609_v22 = vmul.f32 %v3238_v44, %v597_v19 }
 0x151   : > { %v619_v13 = vadd.f32 %v3245_v25, %v607_v9 }
 0x152   : > { %v568_v14 = vmul.f32 %v2605_v57, %v567_v10  ;;  %v621_v24 = vadd.f32 %v3245_v25, %v609_v22 }
 0x153   : > { %v626_v35 = vpack.c.bf16 %v620_v40, %v619_v13 }
 0x154   : > { %v572_v16 = vsel %vm571_vm3, %v2605_v57, %v568_v14 }
 0x155   : > { %v598_v18 = vmul.f32 %v572_v16, %v3203_v52  ;;  %v574_v52 = vmul.f32 %v2607_v30, %v511_v29 }
 0x157   : > { %v610_v21 = vmul.f32 %v3238_v44, %v598_v18  ;;  %v575_v31 = vmul.f32 %v2607_v30, %v574_v52 }
 0x159   : > { %v622_v23 = vadd.f32 %v3245_v25, %v610_v21  ;;  %v576_v34 = vmul.f32 0.5, %v575_v31 }
 0x15b   : > { %v627_v26 = vpack.c.bf16 %v622_v23, %v621_v24  ;;  %v577_v36 = vsub.f32 1.5, %v576_v34  ;;  %v2399_v34 = vld [vmem:[#allocation5] sm:$0xff]  }
 0x15d   : > { %2335 = vmatmul.msk.bf16.gmra.mxu0 %vm417_vm0, %v626_v35  ;;  %v578_v41 = vmul.f32 %v2607_v30, %v577_v36 }
 0x15f   : > { %v582_v45 = vsel %vm581_vm7, %v2607_v30, %v578_v41 }
 0x160   : > { %v599_v48 = vmul.f32 %v582_v45, %v3199_v50  ;;  %v2590_v50 = vld [vmem:[%s3837_s3] ss:$0 sm:$0xff] }
 0x162   : > { %v611_v53 = vmul.f32 %v3238_v44, %v599_v48 }
 0x164   : > { %v623_v55 = vadd.f32 %v3245_v25, %v611_v53 }
 0x16d   : > { %2336 = vmatmul.msk.bf16.gmra.mxu0 %vm417_vm0, %v627_v26 }
 0x1a9   : > { %v496_v39 = vpop.xlane.xlu0 %495 }
 0x1aa   : > { %v504_v32 = vmul.f32 %v496_v39, %v3165_v20 }
 0x1ac   : > { %v512_v33 = vadd.f32 1e-05, %v504_v32 }
 0x1ae   : > { %2608 = vrsqrt.f32 %v512_v33  ;;  %vm589_vm9 = vweird.f32 %v512_v33 }
 0x1b4   : > { %v2609_v38 = vpop.eup %2608 }
 0x1b5   : > { %v584_v42 = vmul.f32 %v2609_v38, %v512_v33  ;;  %vm590_vm8 = vweird.f32 %v2609_v38  ;;  %v2462_v33 = vld [vmem:[#allocation5 + $0x8] sm:$0xff]  }
 0x1b6   : > { %vm591_vm10 = vmor %vm589_vm9, %vm590_vm8  ;;  %v2404_v36 = vunpack.c.l.bf16 %v2462_v33  ;;  %v2405_v48 = vunpack.c.h.bf16 %v2462_v33 }
 0x1b7   : > { %v585_v43 = vmul.f32 %v2609_v38, %v584_v42 }
 0x1b9   : > { %v586_v46 = vmul.f32 0.5, %v585_v43 }
 0x1bb   : > { %v587_v47 = vsub.f32 1.5, %v586_v46 }
 0x1bd   : > { %v588_v49 = vmul.f32 %v2609_v38, %v587_v47 }
 0x1bf   : > { %v592_v20 = vsel %vm591_vm10, %v2609_v38, %v588_v49  ;;  %v2400_v38 = vunpack.c.l.bf16 %v2399_v34  ;;  %v2401_v49 = vunpack.c.h.bf16 %v2399_v34 }
 0x1c0   : > { %v600_v51 = vmul.f32 %v592_v20, %v3217_v8 }
 0x1c2   : > { %v612_v54 = vmul.f32 %v3238_v44, %v600_v51 }
 0x1c4   : > { %v624_v56 = vadd.f32 %v3245_v25, %v612_v54 }
 0x1c6   : > { %v628_v37 = vpack.c.bf16 %v624_v56, %v623_v55 }
 0x1c8   : > { %2337 = vmatmul.msk.bf16.gmra.mxu0 %vm417_vm0, %v628_v37  ;;  %v2463_v37 = vld [vmem:[#allocation5 + $0x10] sm:$0xff]  }
 0x1ca   : > { %v670_v57 = vpop.f32.mrf.mxu0 }
 0x1cb   : > { %v671_v58 = vadd.f32 %v2590_v50, %v670_v57  ;;  %v2408_v57 = vunpack.c.l.bf16 %v2463_v37 }
 0x1cd   : > { %v726_v60 = vpack.c.bf16 %v671_v58, %v671_v58 }
 0x1cf   : > { %v744_v62 = vunpack.c.l.b16 %v726_v60  ;;  %v2464_v60 = vld [vmem:[#allocation5 + $0x18] sm:$0xff]  }
 0x1d2   : > { %v672_v59 = vpop.f32.mrf.mxu0 }
 0x1d3   : > { %v673_v8 = vadd.f32 %v2590_v50, %v672_v59 }
 0x1d5   : > { %v727_v61 = vpack.c.bf16 %v673_v8, %v673_v8  ;;  %v2412_v8 = vunpack.c.l.bf16 %v2464_v60 }
 0x1d7   : > { %v745_v63 = vunpack.c.l.b16 %v727_v61 }
 0x1d9   : > { %v3283_v44 = vpack.c.b16 %v745_v63, %v744_v62 }
 0x1da   : > { %v675_v0 = vpop.f32.mrf.mxu0 }
 0x1db   : > { %747 = vrot.lane.b32.xlu1 %v3283_v44, %s2958_s19  ;;  %v676_v25 = vadd.f32 %v2590_v50, %v675_v0  ;;  %v2413_v0 = vunpack.c.h.bf16 %v2464_v60 }
 0x1dd   : > { %v728_v2 = vpack.c.bf16 %v676_v25, %v676_v25 }
 0x1df   : > { %v772_v5 = vunpack.c.l.b16 %v728_v2 }
 0x1e2   : > { %v677_v1 = vpop.f32.mrf.mxu0 }
 0x1e3   : > { %v678_v3 = vadd.f32 %v2590_v50, %v677_v1 }
 0x1e5   : > { %v729_v4 = vpack.c.bf16 %v678_v3, %v678_v3 }
 0x1e7   : > { %v773_v6 = vunpack.c.l.b16 %v729_v4 }
 0x1e9   : > { %v3287_v7 = vpack.c.b16 %v773_v6, %v772_v5 }
 0x1ea   : > { %v680_v9 = vpop.f32.mrf.mxu0 }
 0x1eb   : > { %775 = vrot.lane.b32.xlu2 %v3287_v7, %s2958_s19  ;;  %v681_v10 = vadd.f32 %v2590_v50, %v680_v9 }
 0x1ed   : > { %v730_v12 = vpack.c.bf16 %v681_v10, %v681_v10 }
 0x1ef   : > { %v799_v40 = vunpack.c.l.b16 %v730_v12 }
 0x1f2   : > { %v682_v11 = vpop.f32.mrf.mxu0 }
 0x1f3   : > { %v683_v13 = vadd.f32 %v2590_v50, %v682_v11 }
 0x1f5   : > { %v731_v14 = vpack.c.bf16 %v683_v13, %v683_v13 }
 0x1f7   : > { %v800_v15 = vunpack.c.l.b16 %v731_v14 }
 0x1f9   : > { %v3291_v35 = vpack.c.b16 %v800_v15, %v799_v40 }
 0x1fb   : > { %802 = vrot.lane.b32.xlu0 %v3291_v35, %s2958_s19 }
 0x245   : > { %v685_v16 = vpop.f32.mrf.mxu0  ;;  %v776_v17 = vpop.permute.xlu2 %775 }
 0x246   : > { %v781_v18 = vsel %vm749_vm11, %v776_v17, 0  ;;  %v686_v19 = vadd.f32 %v2590_v50, %v685_v16 }
 0x247   : > { %790 = vmatpush.bf16.xpose.msra.mxu2 %v781_v18 }
 0x248   : > { %v732_v22 = vpack.c.bf16 %v686_v19, %v686_v19 }
 0x24a   : > { %v826_v28 = vunpack.c.l.b16 %v732_v22 }
 0x24d   : > { %v687_v21 = vpop.f32.mrf.mxu0  ;;  %v748_v23 = vpop.permute.xlu1 %747 }
 0x24e   : > { %v688_v24 = vadd.f32 %v2590_v50, %v687_v21  ;;  %2339 = vmatmul.msk.bf16.vlgmr.msra.gmra.mxu2 %vm749_vm11, %v3287_v7  ;;  %v754_v26 = vsel %vm749_vm11, %v748_v23, 0 }
 0x24f   : > { %763 = vmatpush.bf16.xpose.msra.mxu1 %v754_v26  ;;  %v2409_v26 = vunpack.c.h.bf16 %v2463_v37 }
 0x250   : > { %v733_v27 = vpack.c.bf16 %v688_v24, %v688_v24 }
 0x252   : > { %v827_v29 = vunpack.c.l.b16 %v733_v27 }
 0x254   : > { %v3299_v30 = vpack.c.b16 %v827_v29, %v826_v28 }
 0x256   : > { %829 = vrot.lane.b32.xlu2 %v3299_v30, %s2958_s19  ;;  %2338 = vmatmul.msk.bf16.vlgmr.msra.gmra.mxu1 %vm749_vm11, %v3283_v44  ;;  %s2191_s19 = scalar_lea.hbm %s3842_s8, %s2397_s23 }
 0x26d   : > { %v803_v52 = vpop.permute.xlu0 %802 }
 0x26e   : > { %v808_v31 = vsel %vm749_vm11, %v803_v52, 0 }
 0x26f   : > { %817 = vmatpush.bf16.xpose.msrb.mxu1 %v808_v31 }
 0x276   : > { %2340 = vmatmul.msk.bf16.vlgmr.msrb.gmra.mxu1 %vm749_vm11, %v3291_v35 }
 0x2b0   : > { %v830_v39 = vpop.permute.xlu2 %829 }
 0x2b1   : > { %v835_v32 = vsel %vm749_vm11, %v830_v39, 0 }
 0x2b2   : > { %844 = vmatpush.bf16.xpose.msra.mxu1 %v835_v32 }
 0x2b9   : > { %2341 = vmatmul.msk.bf16.vlgmr.msra.gmra.mxu1 %vm749_vm11, %v3299_v30 }
 0x2d1   : > { %v792_v41 = vpop.f32.mrf.mxu2 }
 0x2d2   : > { %v793_v42 = vadd.f32 %v2404_v36, %v792_v41 }
 0x2d3   : > { %v765_v43 = vpop.f32.mrf.mxu1 }
 0x2d4   : > { %v766_v45 = vadd.f32 %v2400_v38, %v765_v43  ;;  %v858_v46 = vsel %vm851_vm12, %v793_v42, -inf }
 0x2d5   : > { %859 = vmax.xlane.f32.xlu2 %v858_v46 }
 0x2d6   : > { %v852_v47 = vsel %vm851_vm12, %v766_v45, -inf }
 0x2d7   : > { %853 = vmax.xlane.f32.xlu1 %v852_v47 }
 0x2d9   : > { %v794_v20 = vpop.f32.mrf.mxu2 }
 0x2da   : > { %v795_v51 = vadd.f32 %v2405_v48, %v794_v20 }
 0x2db   : > { %v767_v53 = vpop.f32.mrf.mxu1 }
 0x2dc   : > { %v768_v54 = vadd.f32 %v2401_v49, %v767_v53  ;;  %v861_v55 = vsel %vm851_vm12, %v795_v51, -inf }
 0x2de   : > { %v855_v56 = vsel %vm851_vm12, %v768_v54, -inf }
 0x2df   : > { %862 = vmax.xlane.f32.xlu1 %v861_v55  ;;  %856 = vmax.xlane.f32.xlu0 %v855_v56 }
 0x2f3   : > { %v819_v50 = vpop.f32.mrf.mxu1 }
 0x2f4   : > { %v3315_v58 = vadd.f32 %v2408_v57, %v819_v50 }
 0x2fb   : > { %v821_v59 = vpop.f32.mrf.mxu1 }
 0x2fc   : > { %v3342_v28 = vadd.f32 %v2409_v26, %v821_v59 }
 0x2fe   : > { %v867_v31 = vsel %vm851_vm12, %v3342_v28, -inf }
 0x336   : > { %v846_v61 = vpop.f32.mrf.mxu1 }
 0x337   : > { %v847_v62 = vadd.f32 %v2412_v8, %v846_v61 }
 0x339   : > { %v870_v63 = vsel %vm851_vm12, %v847_v62, -inf }
 0x33a   : > { %871 = vmax.xlane.f32.xlu0 %v870_v63 }
 0x33e   : > { %v848_v25 = vpop.f32.mrf.mxu1 }
 0x33f   : > { %v849_v1 = vadd.f32 %v2413_v0, %v848_v25 }
 0x341   : > { %v873_v2 = vsel %vm851_vm12, %v849_v1, -inf }
 0x342   : > { %874 = vmax.xlane.f32.xlu2 %v873_v2 }
 0x348   : > { %v860_v3 = vpop.xlane.xlu2 %859 }
 0x349   : > { %v878_v6 = vsub.f32 %v793_v42, %v860_v3 }
 0x34a   : > { %v854_v4 = vpop.xlane.xlu1 %853 }
 0x34b   : > { %v876_v5 = vsub.f32 %v766_v45, %v854_v4  ;;  %v888_v10 = vmul.f32 1.442695, %v878_v6 }
 0x34d   : > { %v884_v9 = vmul.f32 1.442695, %v876_v5 }
 0x34f   : > { %2610 = vpow2.f32 %v884_v9 }
 0x350   : > { %2612 = vpow2.f32 %v888_v10  ;;  %v864_v10 = vsel %vm851_vm12, %v3315_v58, -inf }
 0x352   : > { %v857_v11 = vpop.xlane.xlu0 %856  ;;  %v863_v12 = vpop.xlane.xlu1 %862 }
 0x353   : > { %v877_v13 = vsub.f32 %v768_v54, %v857_v11  ;;  %v879_v15 = vsub.f32 %v795_v51, %v863_v12 }
 0x355   : > { %v2611_v14 = vpop.eup %2610  ;;  %v886_v40 = vmul.f32 1.442695, %v877_v13  ;;  %v890_v17 = vmul.f32 1.442695, %v879_v15 }
 0x356   : > { %v900_v16 = vsel %vm851_vm12, %v2611_v14, 0.0  ;;  %v3322_v18 = vpop.eup %2612 }
 0x357   : > { %901 = vadd.xlane.f32.xlu1 %v900_v16  ;;  %2614 = vpow2.f32 %v886_v40  ;;  %v906_v21 = vsel %vm851_vm12, %v3322_v18, 0.0 }
 0x358   : > { %2616 = vpow2.f32 %v890_v17 }
 0x35a   : > { %953 = vrot.lane.b32.xlu2 %v3283_v44, %s2959_s1 }
 0x35d   : > { %v2615_v19 = vpop.eup %2614 }
 0x35e   : > { %v903_v22 = vsel %vm851_vm12, %v2615_v19, 0.0  ;;  %v2617_v23 = vpop.eup %2616 }
 0x35f   : > { %907 = vadd.xlane.f32.xlu1 %v906_v21  ;;  %904 = vadd.xlane.f32.xlu0 %v903_v22  ;;  %v909_v24 = vsel %vm851_vm12, %v2617_v23, 0.0 }
 0x362   : > { %1028 = vrot.lane.b32.xlu2 %v3299_v30, %s2959_s1 }
 0x367   : > { %910 = vadd.xlane.f32.xlu0 %v909_v24 }
 0x36a   : > { %1062 = vrot.lane.b32.xlu2 %v3283_v44, %s2960_s16 }
 0x372   : > { %1060 = vrot.lane.b32.xlu2 %v3283_v44, %s2961_s18 }
 0x378   : > { %978 = vrot.lane.b32.xlu1 %v3287_v7, %s2959_s1 }
 0x37a   : > { %1132 = vrot.lane.b32.xlu2 %v3299_v30, %s2961_s18 }
 0x380   : > { %1108 = vrot.lane.b32.xlu1 %v3291_v35, %s2961_s18 }
 0x388   : > { %1134 = vrot.lane.b32.xlu1 %v3299_v30, %s2960_s16 }
 0x3ad   : > { %v872_v27 = vpop.xlane.xlu0 %871 }
 0x3ae   : > { %v882_v29 = vsub.f32 %v847_v62, %v872_v27 }
 0x3b0   : > { %v896_v52 = vmul.f32 1.442695, %v882_v29 }
 0x3b2   : > { %2618 = vpow2.f32 %v896_v52  ;;  %868 = vmax.xlane.f32.xlu1 %v867_v31 }
 0x3b5   : > { %v875_v39 = vpop.xlane.xlu2 %874 }
 0x3b6   : > { %v883_v32 = vsub.f32 %v849_v1, %v875_v39 }
 0x3b8   : > { %v3346_v33 = vpop.eup %2618  ;;  %v898_v34 = vmul.f32 1.442695, %v883_v32 }
 0x3b9   : > { %v918_v36 = vsel %vm851_vm12, %v3346_v33, 0.0 }
 0x3ba   : > { %2620 = vpow2.f32 %v898_v34  ;;  %919 = vadd.xlane.f32.xlu0 %v918_v36 }
 0x3bd   : > { %v954_v38 = vpop.permute.xlu2 %953 }
 0x3be   : > { %966 = vmatpush.bf16.msrb.mxu2 %v954_v38 }
 0x3c0   : > { %v3350_v41 = vpop.eup %2620 }
 0x3c1   : > { %v921_v42 = vsel %vm851_vm12, %v3350_v41, 0.0 }
 0x3c2   : > { %922 = vadd.xlane.f32.xlu0 %v921_v42 }
 0x3c5   : > { %v1029_v43 = vpop.permute.xlu2 %1028 }
 0x3ca   : > { %v902_v45 = vpop.xlane.xlu1 %901 }
 0x3cb   : > { %2622 = vrcp.f32 %v902_v45  ;;  %v2468_v45 = vld [vmem:[#allocation5 + $0x38] sm:$0xff]  }
 0x3cd   : > { %v1063_v46 = vpop.permute.xlu2 %1062 }
 0x3ce   : > { %v1068_v47 = vsel %vm749_vm11, %v1063_v46, 0  ;;  %v2428_v46 = vunpack.c.l.bf16 %v2468_v45 }
 0x3cf   : > { %1077 = vmatpush.bf16.xpose.msra.mxu3 %v1068_v47 }
 0x3d1   : > { %v2623_v49 = vpop.eup %2622 }
 0x3d2   : > { %v905_v48 = vpop.xlane.xlu0 %904  ;;  %v932_v51 = vmul.f32 %v2623_v49, %v2611_v14  ;;  %v908_v55 = vpop.xlane.xlu1 %907 }
 0x3d3   : > { %2624 = vrcp.f32 %v905_v48 }
 0x3d4   : > { %v940_v54 = vpack.c.bf16 %v932_v51, %v932_v51 }
 0x3d5   : > { %v1061_v20 = vpop.permute.xlu2 %1060 }
 0x3d6   : > { %2346 = vmatmul.msk.bf16.vlgmr.msra.gmra.mxu3 %vm749_vm11, %v1061_v20  ;;  %1110 = vrot.lane.b32.xlu0 %v3291_v35, %s2960_s16  ;;  %v950_v50 = vunpack.c.l.b16 %v940_v54  ;;  %v2429_v20 = vunpack.c.h.bf16 %v2468_v45 }
 0x3d9   : > { %v2625_v53 = vpop.eup %2624 }
 0x3da   : > { %v933_v56 = vmul.f32 %v2625_v53, %v2615_v19  ;;  %v911_v37 = vpop.xlane.xlu0 %910 }
 0x3db   : > { %2626 = vrcp.f32 %v911_v37 }
 0x3dc   : > { %v941_v57 = vpack.c.bf16 %v933_v56, %v933_v56  ;;  %2628 = vrcp.f32 %v908_v55 }
 0x3dd   : > { %v1133_v11 = vpop.permute.xlu2 %1132 }
 0x3de   : > { %v951_v59 = vunpack.c.l.b16 %v941_v57 }
 0x3e0   : > { %v952_v60 = vpack.c.b16 %v951_v59, %v950_v50 }
 0x3e1   : > { %v2627_v8 = vpop.eup %2626 }
 0x3e2   : > { %2342 = vmatmul.msk.bf16.vlgmr.msrb.gmra.mxu2 %vm851_vm12, %v952_v60  ;;  %v2629_v61 = vpop.eup %2628  ;;  %v935_v62 = vmul.f32 %v2627_v8, %v2617_v23  ;;  %v2467_v60 = vld [vmem:[#allocation5 + $0x30] sm:$0xff]  }
 0x3e3   : > { %v934_v63 = vmul.f32 %v2629_v61, %v3322_v18  ;;  %v2424_v8 = vunpack.c.l.bf16 %v2467_v60 }
 0x3e4   : > { %v943_v0 = vpack.c.bf16 %v935_v62, %v935_v62 }
 0x3e5   : > { %v942_v1 = vpack.c.bf16 %v934_v63, %v934_v63 }
 0x3e6   : > { %v976_v2 = vunpack.c.l.b16 %v943_v0  ;;  %v2425_v0 = vunpack.c.h.bf16 %v2467_v60 }
 0x3e7   : > { %v975_v3 = vunpack.c.l.b16 %v942_v1 }
 0x3e9   : > { %v977_v4 = vpack.c.b16 %v976_v2, %v975_v3 }
 0x3ea   : > { %v979_v25 = vpop.permute.xlu1 %978 }
 0x3eb   : > { %991 = vmatpush.bf16.msra.mxu2 %v979_v25 }
 0x3ef   : > { %1041 = vmatpush.bf16.msrb.mxu2 %v1029_v43 }
 0x3f2   : > { %v1109_v5 = vpop.permute.xlu1 %1108  ;;  %2343 = vmatmul.msk.bf16.vlgmr.msra.gmra.mxu2 %vm851_vm12, %v977_v4 }
 0x3fa   : > { %v1135_v6 = vpop.permute.xlu1 %1134 }
 0x3fb   : > { %v1140_v9 = vsel %vm749_vm11, %v1135_v6, 0 }
 0x3fc   : > { %1149 = vmatpush.bf16.xpose.msrb.mxu3 %v1140_v9 }
 0x400   : > { %865 = vmax.xlane.f32.xlu0 %v864_v10 }
 0x403   : > { %2349 = vmatmul.msk.bf16.vlgmr.msrb.gmra.mxu3 %vm749_vm11, %v1133_v11 }
 0x425   : > { %v869_v12 = vpop.xlane.xlu1 %868 }
 0x426   : > { %v881_v13 = vsub.f32 %v3342_v28, %v869_v12 }
 0x428   : > { %v894_v14 = vmul.f32 1.442695, %v881_v13 }
 0x42a   : > { %2630 = vpow2.f32 %v894_v14 }
 0x42d   : > { %v920_v40 = vpop.xlane.xlu0 %919 }
 0x42e   : > { %2632 = vrcp.f32 %v920_v40 }
 0x430   : > { %v3366_v15 = vpop.eup %2630 }
 0x431   : > { %v915_v16 = vsel %vm851_vm12, %v3366_v15, 0.0 }
 0x432   : > { %916 = vadd.xlane.f32.xlu0 %v915_v16 }
 0x434   : > { %v2633_v18 = vpop.eup %2632 }
 0x435   : > { %v923_v17 = vpop.xlane.xlu0 %922  ;;  %v938_v19 = vmul.f32 %v2633_v18, %v3346_v33 }
 0x436   : > { %2634 = vrcp.f32 %v923_v17 }
 0x437   : > { %v946_v22 = vpack.c.bf16 %v938_v19, %v938_v19 }
 0x439   : > { %v1025_v26 = vunpack.c.l.b16 %v946_v22 }
 0x43c   : > { %v2635_v21 = vpop.eup %2634 }
 0x43d   : > { %v939_v23 = vmul.f32 %v2635_v21, %v3350_v41 }
 0x43f   : > { %v947_v24 = vpack.c.bf16 %v939_v23, %v939_v23 }
 0x441   : > { %v1026_v27 = vunpack.c.l.b16 %v947_v24 }
 0x443   : > { %v1027_v28 = vpack.c.b16 %v1026_v27, %v1025_v26 }
 0x445   : > { %2345 = vmatmul.msk.bf16.vlgmr.msrb.gmra.mxu2 %vm851_vm12, %v1027_v28 }
 0x446   : > { %1003 = vrot.lane.b32.xlu0 %v3291_v35, %s2959_s1  ;;  %s2192_s1 = sshll.u32 %s3761_s13, 4  ;;  %s2193_s1 = int_to_ptr.vmem [resolvable:$true] %s2192_s1 }
 0x448   : > { %v1111_v29 = vpop.permute.xlu0 %1110 }
 0x449   : > { %v1116_v52 = vsel %vm749_vm11, %v1111_v29, 0 }
 0x44a   : > { %1125 = vmatpush.bf16.xpose.msra.mxu2 %v1116_v52 }
 0x455   : > { %2348 = vmatmul.msk.bf16.vlgmr.msra.gmra.mxu2 %vm749_vm11, %v1109_v5 }
 0x459   : > { %v3384_v36 = vpop.f32.mrf.mxu3 }
 0x461   : > { %v3386_v42 = vpop.f32.mrf.mxu3 }
 0x465   : > { %v3377_v31 = vpop.f32.mrf.mxu2 }
 0x46d   : > { %v3379_v39 = vpop.f32.mrf.mxu2 }
 0x46e   : > { %v1048_v32 = vpack.c.bf16 %v3379_v39, %v3377_v31 }
 0x473   : > { %v866_v33 = vpop.xlane.xlu0 %865 }
 0x474   : > { %v880_v34 = vsub.f32 %v3315_v58, %v866_v33 }
 0x475   : > { %v3393_v55 = vpop.f32.mrf.mxu2 }
 0x476   : > { %v892_v38 = vmul.f32 1.442695, %v880_v34 }
 0x478   : > { %2636 = vpow2.f32 %v892_v38 }
 0x47d   : > { %v3395_v37 = vpop.f32.mrf.mxu2 }
 0x47e   : > { %v2637_v41 = vpop.eup %2636 }
 0x47f   : > { %v912_v43 = vsel %vm851_vm12, %v2637_v41, 0.0 }
 0x480   : > { %913 = vadd.xlane.f32.xlu2 %v912_v43 }
 0x486   : > { %v1151_v47 = vpop.f32.mrf.mxu3 }
 0x487   : > { %v1152_v48 = vadd.f32 %v2428_v46, %v1151_v47 }
 0x489   : > { %v1174_v49 = vsel %vm851_vm12, %v1152_v48, -inf }
 0x48a   : > { %1175 = vmax.xlane.f32.xlu1 %v1174_v49 }
 0x48e   : > { %v1153_v51 = vpop.f32.mrf.mxu3 }
 0x48f   : > { %v1154_v58 = vadd.f32 %v2429_v20, %v1153_v51 }
 0x491   : > { %v1177_v53 = vsel %vm851_vm12, %v1154_v58, -inf }
 0x492   : > { %1178 = vmax.xlane.f32.xlu2 %v1177_v53 }
 0x4a5   : > { %v917_v54 = vpop.xlane.xlu0 %916 }
 0x4a6   : > { %2638 = vrcp.f32 %v917_v54 }
 0x4aa   : > { %1084 = vrot.lane.b32.xlu2 %v3287_v7, %s2961_s18 }
 0x4ac   : > { %v2639_v4 = vpop.eup %2638 }
 0x4ad   : > { %v937_v5 = vmul.f32 %v2639_v4, %v3366_v15 }
 0x4af   : > { %v945_v9 = vpack.c.bf16 %v937_v5, %v937_v5 }
 0x4b1   : > { %v1001_v12 = vunpack.c.l.b16 %v945_v9 }
 0x4b8   : > { %v1004_v56 = vpop.permute.xlu0 %1003 }
 0x4b9   : > { %1016 = vmatpush.bf16.msrb.mxu1 %v1004_v56 }
 0x4c8   : > { %v3397_v57 = vpop.f32.mrf.mxu2 }
 0x4d0   : > { %v3399_v50 = vpop.f32.mrf.mxu2 }
 0x4d1   : > { %v1051_v59 = vpack.c.bf16 %v3399_v50, %v3397_v57 }
 0x4d8   : > { %v1127_v61 = vpop.f32.mrf.mxu2 }
 0x4d9   : > { %v1128_v62 = vadd.f32 %v2424_v8, %v1127_v61 }
 0x4db   : > { %v1168_v63 = vsel %vm851_vm12, %v1128_v62, -inf }
 0x4dc   : > { %1169 = vmax.xlane.f32.xlu1 %v1168_v63 }
 0x4e0   : > { %v1129_v25 = vpop.f32.mrf.mxu2 }
 0x4e1   : > { %v1130_v1 = vadd.f32 %v2425_v0, %v1129_v25 }
 0x4e3   : > { %v1171_v2 = vsel %vm851_vm12, %v1130_v1, -inf }
 0x4e4   : > { %1172 = vmax.xlane.f32.xlu2 %v1171_v2 }
 0x4f3   : > { %v914_v3 = vpop.xlane.xlu2 %913 }
 0x4f4   : > { %2640 = vrcp.f32 %v914_v3 }
 0x4f5   : > { %1086 = vrot.lane.b32.xlu1 %v3287_v7, %s2960_s16  ;;  %s2194_s16 = sshll.u32 %s2191_s19, 4  ;;  %s2195_s16 = int_to_ptr.hbm [resolvable:$true] %s2194_s16 }
 0x4f6   : > { %s2872_s18 = sshra.s32 %s2195_s16, 4  ;;  %s2873_s18 = int_to_ptr.hbm [resolvable:$true] %s2872_s18 }
 0x4f7   : > { %p2879_p10 = scmp.lt.s32.totalorder %s2873_s18, %s3842_s8 }
 0x4fa   : > { %v2641_v6 = vpop.eup %2640 }
 0x4fb   : > { %v936_v10 = vmul.f32 %v2641_v6, %v2637_v41 }
 0x4fc   : > { %1307 = vrot.lane.b32.xlu2 %v3291_v35, %s2962_s21 }
 0x4fd   : > { %v944_v11 = vpack.c.bf16 %v936_v10, %v936_v10  ;;  %v1176_v18 = vpop.xlane.xlu1 %1175 }
 0x4fe   : > { %v1186_v21 = vsub.f32 %v1152_v48, %v1176_v18  ;;  %v2466_v18 = vld [vmem:[#allocation5 + $0x28] sm:$0xff]  }
 0x4ff   : > { %v1000_v13 = vunpack.c.l.b16 %v944_v11 }
 0x500   : > { %v1200_v22 = vmul.f32 1.442695, %v1186_v21 }
 0x501   : > { %v1002_v14 = vpack.c.b16 %v1001_v12, %v1000_v13 }
 0x503   : > { %2344 = vmatmul.msk.bf16.vlgmr.msrb.gmra.mxu1 %vm851_vm12, %v1002_v14 }
 0x505   : > { %v1179_v40 = vpop.xlane.xlu2 %1178 }
 0x506   : > { %v1187_v16 = vsub.f32 %v1154_v58, %v1179_v40 }
 0x508   : > { %v1202_v17 = vmul.f32 1.442695, %v1187_v16 }
 0x50a   : > { %2642 = vpow2.f32 %v1202_v17 }
 0x50b   : > { %2644 = vpow2.f32 %v1200_v22 }
 0x50d   : > { %v1085_v26 = vpop.permute.xlu2 %1084 }
 0x510   : > { %v2643_v19 = vpop.eup %2642 }
 0x511   : > { %v1225_v15 = vsel %vm851_vm12, %v2643_v19, 0.0  ;;  %v2645_v23 = vpop.eup %2644 }
 0x512   : > { %1226 = vadd.xlane.f32.xlu0 %v1225_v15  ;;  %v1222_v24 = vsel %vm851_vm12, %v2645_v23, 0.0  ;;  %v2420_v15 = vunpack.c.l.bf16 %v2466_v18 }
 0x525   : > { %1223 = vadd.xlane.f32.xlu2 %v1222_v24 }
 0x526   : > { %1455 = vrot.lane.b32.xlu0 %v3283_v44, %s2963_s24 }
 0x53d   : > { %1332 = vrot.lane.b32.xlu2 %v3299_v30, %s2962_s21 }
 0x545   : > { %1525 = vrot.lane.b32.xlu2 %v3299_v30, %s2964_s25 }
 0x54f   : > { %v1170_v27 = vpop.xlane.xlu1 %1169 }
 0x550   : > { %v1184_v28 = vsub.f32 %v1128_v62, %v1170_v27 }
 0x552   : > { %v1196_v29 = vmul.f32 1.442695, %v1184_v28  ;;  %v2421_v28 = vunpack.c.h.bf16 %v2466_v18 }
 0x554   : > { %2646 = vpow2.f32 %v1196_v29 }
 0x557   : > { %v1173_v52 = vpop.xlane.xlu2 %1172 }
 0x558   : > { %v1185_v33 = vsub.f32 %v1130_v1, %v1173_v52 }
 0x55a   : > { %v2647_v34 = vpop.eup %2646  ;;  %v1198_v38 = vmul.f32 1.442695, %v1185_v33 }
 0x55b   : > { %v1216_v41 = vsel %vm851_vm12, %v2647_v34, 0.0 }
 0x55c   : > { %2648 = vpow2.f32 %v1198_v38  ;;  %1217 = vadd.xlane.f32.xlu0 %v1216_v41 }
 0x55f   : > { %v1308_v43 = vpop.permute.xlu2 %1307 }
 0x560   : > { %1320 = vmatpush.bf16.msrb.mxu2 %v1308_v43 }
 0x562   : > { %v2649_v45 = vpop.eup %2648 }
 0x563   : > { %v1219_v46 = vsel %vm851_vm12, %v2649_v45, 0.0 }
 0x564   : > { %1220 = vadd.xlane.f32.xlu1 %v1219_v46 }
 0x567   : > { %v1087_v47 = vpop.permute.xlu1 %1086 }
 0x568   : > { %v1092_v48 = vsel %vm749_vm11, %v1087_v47, 0 }
 0x569   : > { %1101 = vmatpush.bf16.xpose.msra.mxu1 %v1092_v48 }
 0x570   : > { %1503 = vrot.lane.b32.xlu0 %v3291_v35, %s2963_s24  ;;  %2347 = vmatmul.msk.bf16.vlgmr.msra.gmra.mxu1 %vm749_vm11, %v1085_v26 }
 0x578   : > { %1479 = vrot.lane.b32.xlu0 %v3287_v7, %s2963_s24 }
 0x57d   : > { %1453 = vrot.lane.b32.xlu1 %v3283_v44, %s2964_s25 }
 0x580   : > { %1477 = vrot.lane.b32.xlu0 %v3287_v7, %s2964_s25  ;;  %v3433_v4 = vpop.f32.mrf.mxu1 }
 0x585   : > { %1501 = vrot.lane.b32.xlu1 %v3291_v35, %s2964_s25  ;;  %v1227_v49 = vpop.xlane.xlu0 %1226 }
 0x586   : > { %2650 = vrcp.f32 %v1227_v49 }
 0x588   : > { %v3435_v40 = vpop.f32.mrf.mxu1 }
 0x589   : > { %v1050_v31 = vpack.c.bf16 %v3435_v40, %v3433_v4  ;;  %v3532_v4 = vld [vmem:[#allocation5 + $0x20] sm:$0xff]  }
 0x58a   : > { %v2416_v40 = vunpack.c.l.bf16 %v3532_v4 }
 0x58c   : > { %v2651_v51 = vpop.eup %2650 }
 0x58d   : > { %1527 = vrot.lane.b32.xlu1 %v3299_v30, %s2963_s24  ;;  %v1243_v54 = vmul.f32 %v2651_v51, %v2643_v19 }
 0x58f   : > { %v1251_v60 = vpack.c.bf16 %v1243_v54, %v1243_v54 }
 0x591   : > { %v1330_v63 = vunpack.c.l.b16 %v1251_v60  ;;  %v2470_v60 = vld [vmem:[#allocation5 + $0x48] sm:$0xff]  }
 0x598   : > { %v1224_v20 = vpop.xlane.xlu2 %1223  ;;  %v1456_v58 = vpop.permute.xlu0 %1455 }
 0x599   : > { %2652 = vrcp.f32 %v1224_v20  ;;  %v1461_v53 = vsel %vm749_vm11, %v1456_v58, 0 }
 0x59a   : > { %1470 = vmatpush.bf16.xpose.msra.mxu2 %v1461_v53 }
 0x59f   : > { %v2653_v56 = vpop.eup %2652 }
 0x5a0   : > { %v1242_v8 = vmul.f32 %v2653_v56, %v2645_v23  ;;  %v1333_v61 = vpop.permute.xlu2 %1332 }
 0x5a1   : > { %1345 = vmatpush.bf16.msra.mxu3 %v1333_v61 }
 0x5a2   : > { %v1250_v62 = vpack.c.bf16 %v1242_v8, %v1242_v8 }
 0x5a4   : > { %v1329_v0 = vunpack.c.l.b16 %v1250_v62  ;;  %v2436_v62 = vunpack.c.l.bf16 %v2470_v60 }
 0x5a6   : > { %v1331_v25 = vpack.c.b16 %v1330_v63, %v1329_v0 }
 0x5a8   : > { %2353 = vmatmul.msk.bf16.vlgmr.msra.gmra.mxu3 %vm851_vm12, %v1331_v25  ;;  %v1526_v43 = vpop.permute.xlu2 %1525 }
 0x5cf   : > { %v1218_v1 = vpop.xlane.xlu0 %1217 }
 0x5d0   : > { %2654 = vrcp.f32 %v1218_v1 }
 0x5d6   : > { %v2655_v3 = vpop.eup %2654 }
 0x5d7   : > { %v1221_v2 = vpop.xlane.xlu1 %1220  ;;  %v1240_v5 = vmul.f32 %v2655_v3, %v2647_v34  ;;  %v2437_v3 = vunpack.c.h.bf16 %v2470_v60 }
 0x5d8   : > { %2656 = vrcp.f32 %v1221_v2 }
 0x5d9   : > { %v1248_v9 = vpack.c.bf16 %v1240_v5, %v1240_v5 }
 0x5db   : > { %v1304_v13 = vunpack.c.l.b16 %v1248_v9 }
 0x5de   : > { %v2657_v6 = vpop.eup %2656 }
 0x5df   : > { %v1241_v10 = vmul.f32 %v2657_v6, %v2649_v45 }
 0x5e1   : > { %v1249_v11 = vpack.c.bf16 %v1241_v10, %v1241_v10 }
 0x5e2   : > { %v1504_v12 = vpop.permute.xlu0 %1503 }
 0x5e3   : > { %v1305_v14 = vunpack.c.l.b16 %v1249_v11  ;;  %v1509_v17 = vsel %vm749_vm11, %v1504_v12, 0  ;;  %v2472_v11 = vld [vmem:[#allocation5 + $0x58] sm:$0xff]  }
 0x5e4   : > { %v2445_v12 = vunpack.c.h.bf16 %v2472_v11 }
 0x5e5   : > { %v1306_v16 = vpack.c.b16 %v1305_v14, %v1304_v13 }
 0x5e7   : > { %2352 = vmatmul.msk.bf16.vlgmr.msrb.gmra.mxu2 %vm851_vm12, %v1306_v16 }
 0x5e8   : > { %1518 = vmatpush.bf16.xpose.msrb.mxu2 %v1509_v17  ;;  %v2444_v17 = vunpack.c.l.bf16 %v2472_v11 }
 0x5ea   : > { %v1480_v19 = vpop.permute.xlu0 %1479 }
 0x5eb   : > { %v1485_v21 = vsel %vm749_vm11, %v1480_v19, 0 }
 0x5ec   : > { %1494 = vmatpush.bf16.xpose.msrb.mxu3 %v1485_v21 }
 0x5ed   : > { %v1103_v22 = vpop.f32.mrf.mxu1 }
 0x5ee   : > { %v1104_v23 = vadd.f32 %v2420_v15, %v1103_v22 }
 0x5ef   : > { %v1454_v24 = vpop.permute.xlu1 %1453 }
 0x5f0   : > { %v1162_v26 = vsel %vm851_vm12, %v1104_v23, -inf }
 0x5f1   : > { %1163 = vmax.xlane.f32.xlu0 %v1162_v26 }
 0x5f2   : > { %v1478_v27 = vpop.permute.xlu0 %1477 }
 0x5f3   : > { %2363 = vmatmul.msk.bf16.vlgmr.msrb.gmra.mxu3 %vm749_vm11, %v1478_v27 }
 0x5f5   : > { %v1105_v29 = vpop.f32.mrf.mxu1 }
 0x5f6   : > { %v1106_v52 = vadd.f32 %v2421_v28, %v1105_v29 }
 0x5f7   : > { %v1502_v33 = vpop.permute.xlu1 %1501  ;;  %2362 = vmatmul.msk.bf16.vlgmr.msra.gmra.mxu2 %vm749_vm11, %v1454_v24 }
 0x5f8   : > { %v1165_v34 = vsel %vm851_vm12, %v1106_v52, -inf }
 0x5f9   : > { %1166 = vmax.xlane.f32.xlu1 %v1165_v34 }
 0x5ff   : > { %v1528_v38 = vpop.permute.xlu1 %1527 }
 0x600   : > { %v1533_v41 = vsel %vm749_vm11, %v1528_v38, 0 }
 0x601   : > { %1542 = vmatpush.bf16.xpose.msra.mxu3 %v1533_v41 }
 0x607   : > { %2364 = vmatmul.msk.bf16.vlgmr.msrb.gmra.mxu2 %vm749_vm11, %v1502_v33  ;;  %v2469_v33 = vld [vmem:[#allocation5 + $0x40] sm:$0xff]  }
 0x608   : > { %2365 = vmatmul.msk.bf16.vlgmr.msra.gmra.mxu3 %vm749_vm11, %v1526_v43 }
 0x62b   : > { %v3447_v45 = vpop.f32.mrf.mxu3 }
 0x633   : > { %v3451_v58 = vpop.f32.mrf.mxu3 }
 0x664   : > { %v1164_v46 = vpop.xlane.xlu0 %1163 }
 0x665   : > { %v1182_v47 = vsub.f32 %v1104_v23, %v1164_v46 }
 0x667   : > { %v1192_v48 = vmul.f32 1.442695, %v1182_v47  ;;  %v2432_v47 = vunpack.c.l.bf16 %v2469_v33 }
 0x669   : > { %2658 = vpow2.f32 %v1192_v48 }
 0x66a   : > { %v3449_v49 = vpop.f32.mrf.mxu2 }
 0x66c   : > { %v1167_v20 = vpop.xlane.xlu1 %1166 }
 0x66d   : > { %v1183_v51 = vsub.f32 %v1106_v52, %v1167_v20 }
 0x66f   : > { %v2659_v53 = vpop.eup %2658  ;;  %v1194_v54 = vmul.f32 1.442695, %v1183_v51 }
 0x670   : > { %v1210_v56 = vsel %vm851_vm12, %v2659_v53, 0.0 }
 0x671   : > { %2660 = vpow2.f32 %v1194_v54  ;;  %1211 = vadd.xlane.f32.xlu2 %v1210_v56  ;;  %v690_v54 = vld [vmem:[#allocation8] sm:$0xf] }
 0x672   : > { %v3454_v8 = vpop.f32.mrf.mxu2 }
 0x673   : > { %v1354_v61 = vpack.c.bf16 %v3454_v8, %v3449_v49 }
 0x676   : > { %v1496_v63 = vpop.f32.mrf.mxu3 }
 0x677   : > { %v2661_v0 = vpop.eup %2660  ;;  %v1497_v25 = vadd.f32 %v2436_v62, %v1496_v63  ;;  %v2471_v63 = vld [vmem:[#allocation5 + $0x50] sm:$0xff]  }
 0x678   : > { %v1213_v1 = vsel %vm851_vm12, %v2661_v0, 0.0 }
 0x679   : > { %1214 = vadd.xlane.f32.xlu0 %v1213_v1  ;;  %v1555_v2 = vsel %vm851_vm12, %v1497_v25, -inf }
 0x67a   : > { %1556 = vmax.xlane.f32.xlu1 %v1555_v2  ;;  %v1472_v21 = vpop.f32.mrf.mxu2  ;;  %v2433_v2 = vunpack.c.h.bf16 %v2469_v33  ;;  %v3538_v33 = vadd.f32 %v2416_v40, %v3384_v36 }
 0x67b   : > { %v3481_v56 = vadd.f32 %v2432_v47, %v1472_v21 }
 0x67c   : > { %v1156_v57 = vsel %vm851_vm12, %v3538_v33, -inf }
 0x67e   : > { %v1498_v5 = vpop.f32.mrf.mxu3 }
 0x67f   : > { %v1499_v6 = vadd.f32 %v2437_v3, %v1498_v5  ;;  %v2440_v5 = vunpack.c.l.bf16 %v2471_v63 }
 0x681   : > { %v1558_v9 = vsel %vm851_vm12, %v1499_v6, -inf }
 0x682   : > { %1559 = vmax.xlane.f32.xlu2 %v1558_v9  ;;  %v1474_v34 = vpop.f32.mrf.mxu2  ;;  %v1549_v9 = vsel %vm851_vm12, %v3481_v56, -inf }
 0x683   : > { %v3491_v11 = vadd.f32 %v2433_v2, %v1474_v34 }
 0x68a   : > { %v1520_v3 = vpop.f32.mrf.mxu2 }
 0x68b   : > { %v1544_v10 = vpop.f32.mrf.mxu3 }
 0x68c   : > { %v3469_v18 = vadd.f32 %v2444_v17, %v1544_v10  ;;  %v1552_v17 = vsel %vm851_vm12, %v3491_v11, -inf }
 0x68d   : > { %1282 = vrot.lane.b32.xlu0 %v3287_v7, %s2962_s21 }
 0x68e   : > { %v1567_v19 = vsel %vm851_vm12, %v3469_v18, -inf }
 0x693   : > { %v1546_v13 = vpop.f32.mrf.mxu3 }
 0x694   : > { %v3463_v14 = vadd.f32 %v2445_v12, %v1546_v13  ;;  %v3493_v12 = vadd.f32 %v2440_v5, %v1520_v3  ;;  %v2441_v13 = vunpack.c.h.bf16 %v2471_v63 }
 0x696   : > { %v1570_v16 = vsel %vm851_vm12, %v3463_v14, -inf }
 0x697   : > { %1571 = vmax.xlane.f32.xlu1 %v1570_v16  ;;  %v1561_v16 = vsel %vm851_vm12, %v3493_v12, -inf }
 0x69a   : > { %1650 = vrot.lane.b32.xlu2 %v3283_v44, %s2965_s14 }
 0x6b7   : > { %1568 = vmax.xlane.f32.xlu0 %v1567_v19  ;;  %v1522_v19 = vpop.f32.mrf.mxu2 }
 0x6cb   : > { %1811 = vrot.lane.b32.xlu0 %v3283_v44, %s2966_s11 }
 0x6d3   : > { %1675 = vrot.lane.b32.xlu0 %v3287_v7, %s2965_s14 }
 0x6e4   : > { %v1212_v15 = vpop.xlane.xlu2 %1211 }
 0x6ec   : > { %v1215_v22 = vpop.xlane.xlu0 %1214 }
 0x6ed   : > { %2662 = vrcp.f32 %v1215_v22  ;;  %v1557_v23 = vpop.xlane.xlu1 %1556  ;;  %v3500_v22 = vadd.f32 %v2441_v13, %v1522_v19 }
 0x6ee   : > { %2664 = vrcp.f32 %v1212_v15  ;;  %v1575_v24 = vsub.f32 %v1497_v25, %v1557_v23 }
 0x6f0   : > { %v1585_v26 = vmul.f32 1.442695, %v1575_v24  ;;  %v1564_v24 = vsel %vm851_vm12, %v3500_v22, -inf }
 0x6f2   : > { %2666 = vpow2.f32 %v1585_v26 }
 0x6f3   : > { %v2663_v27 = vpop.eup %2662 }
 0x6f4   : > { %v2665_v28 = vpop.eup %2664  ;;  %v1239_v29 = vmul.f32 %v2663_v27, %v2661_v0 }
 0x6f5   : > { %v1560_v52 = vpop.xlane.xlu2 %1559  ;;  %v1238_v41 = vmul.f32 %v2665_v28, %v2659_v53  ;;  %v1414_v53 = vsel %vm1368_vm13, %v690_v54, 0 }
 0x6f6   : > { %v1576_v38 = vsub.f32 %v1499_v6, %v1560_v52  ;;  %v1247_v48 = vpack.c.bf16 %v1239_v29, %v1239_v29 }
 0x6f7   : > { %v1246_v51 = vpack.c.bf16 %v1238_v41, %v1238_v41 }
 0x6f8   : > { %v3477_v43 = vpop.eup %2666  ;;  %v1587_v46 = vmul.f32 1.442695, %v1576_v38  ;;  %v1280_v60 = vunpack.c.l.b16 %v1247_v48 }
 0x6f9   : > { %v1603_v20 = vsel %vm851_vm12, %v3477_v43, 0.0  ;;  %v1279_v0 = vunpack.c.l.b16 %v1246_v51 }
 0x6fa   : > { %2668 = vpow2.f32 %v1587_v46  ;;  %1604 = vadd.xlane.f32.xlu1 %v1603_v20 }
 0x6fb   : > { %v1281_v6 = vpack.c.b16 %v1280_v60, %v1279_v0 }
 0x6fd   : > { %v1651_v62 = vpop.permute.xlu2 %1650 }
 0x6fe   : > { %1663 = vmatpush.bf16.msra.mxu2 %v1651_v62 }
 0x6ff   : > { %v1283_v25 = vpop.permute.xlu0 %1282 }
 0x700   : > { %v3484_v1 = vpop.eup %2668  ;;  %1295 = vmatpush.bf16.msrb.mxu1 %v1283_v25 }
 0x701   : > { %v1606_v10 = vsel %vm851_vm12, %v3484_v1, 0.0 }
 0x702   : > { %1550 = vmax.xlane.f32.xlu1 %v1549_v9  ;;  %1607 = vadd.xlane.f32.xlu2 %v1606_v10 }
 0x703   : > { %2351 = vmatmul.msk.bf16.vlgmr.msrb.gmra.mxu1 %vm851_vm12, %v1281_v6 }
 0x704   : > { %1423 = vmatpush.bf16.msra.mxu1 %v1414_v53 }
 0x70a   : > { %1562 = vmax.xlane.f32.xlu1 %v1561_v16  ;;  %v1572_v15 = vpop.xlane.xlu1 %1571  ;;  %1553 = vmax.xlane.f32.xlu2 %v1552_v17 }
 0x70b   : > { %v1580_v21 = vsub.f32 %v3463_v14, %v1572_v15  ;;  %v1049_v14 = vpack.c.bf16 %v3395_v37, %v3393_v55 }
 0x70d   : > { %v1595_v23 = vmul.f32 1.442695, %v1580_v21 }
 0x70f   : > { %2670 = vpow2.f32 %v1595_v23 }
 0x712   : > { %1565 = vmax.xlane.f32.xlu2 %v1564_v24 }
 0x713   : > { %2358 = vmatmul.msk.bf16.vlgmr.msra.gmra.mxu1 %vm749_vm11, %v1048_v32 }
 0x715   : > { %v3508_v26 = vpop.eup %2670 }
 0x716   : > { %v1618_v27 = vsel %vm851_vm12, %v3508_v26, 0.0 }
 0x717   : > { %1619 = vadd.xlane.f32.xlu0 %v1618_v27 }
 0x723   : > { %1700 = vrot.lane.b32.xlu1 %v3291_v35, %s2965_s14  ;;  %2359 = vmatmul.msk.bf16.gmra.mxu1 %vm749_vm11, %v1049_v14 }
 0x72a   : > { %1809 = vrot.lane.b32.xlu2 %v3283_v44, %s2967_s17  ;;  %v1569_v39 = vpop.xlane.xlu0 %1568 }
 0x72b   : > { %1859 = vrot.lane.b32.xlu0 %v3291_v35, %s2966_s11  ;;  %v1579_v32 = vsub.f32 %v3469_v18, %v1569_v39 }
 0x72d   : > { %v1593_v28 = vmul.f32 1.442695, %v1579_v32 }
 0x72f   : > { %2672 = vpow2.f32 %v1593_v28 }
 0x733   : > { %2360 = vmatmul.msk.bf16.gmra.mxu1 %vm749_vm11, %v1050_v31 }
 0x735   : > { %v3530_v52 = vpop.eup %2672 }
 0x736   : > { %v1615_v18 = vsel %vm851_vm12, %v3530_v52, 0.0 }
 0x73d   : > { %v1812_v55 = vpop.permute.xlu0 %1811 }
 0x73e   : > { %v1817_v37 = vsel %vm749_vm11, %v1812_v55, 0  ;;  %v2417_v55 = vunpack.c.h.bf16 %v3532_v4 }
 0x73f   : > { %1826 = vmatpush.bf16.xpose.msrb.mxu1 %v1817_v37 }
 0x740   : > { %v3592_v28 = vadd.f32 %v2417_v55, %v3386_v42 }
 0x742   : > { %v1159_v40 = vsel %vm851_vm12, %v3592_v28, -inf }
 0x743   : > { %2361 = vmatmul.msk.bf16.gmra.mxu1 %vm749_vm11, %v1051_v59 }
 0x745   : > { %v1676_v29 = vpop.permute.xlu0 %1675 }
 0x746   : > { %1688 = vmatpush.bf16.msrb.mxu3 %v1676_v29 }
 0x74d   : > { %1616 = vadd.xlane.f32.xlu1 %v1615_v18 }
 0x755   : > { %1157 = vmax.xlane.f32.xlu0 %v1156_v57 }
 0x76d   : > { %v1605_v50 = vpop.xlane.xlu1 %1604 }
 0x76e   : > { %2674 = vrcp.f32 %v1605_v50 }
 0x774   : > { %v2675_v38 = vpop.eup %2674 }
 0x775   : > { %v1551_v59 = vpop.xlane.xlu1 %1550  ;;  %v1608_v34 = vpop.xlane.xlu2 %1607  ;;  %v1631_v47 = vmul.f32 %v2675_v38, %v3477_v43 }
 0x776   : > { %v1573_v41 = vsub.f32 %v3481_v56, %v1551_v59  ;;  %2676 = vrcp.f32 %v1608_v34 }
 0x777   : > { %v1639_v20 = vpack.c.bf16 %v1631_v47, %v1631_v47 }
 0x778   : > { %v1581_v46 = vmul.f32 1.442695, %v1573_v41 }
 0x779   : > { %v1672_v56 = vunpack.c.l.b16 %v1639_v20 }
 0x77a   : > { %2678 = vpow2.f32 %v1581_v46 }
 0x77c   : > { %v2677_v48 = vpop.eup %2676 }
 0x77d   : > { %v1632_v36 = vmul.f32 %v2677_v48, %v3484_v1  ;;  %v1554_v51 = vpop.xlane.xlu2 %1553  ;;  %v1563_v54 = vpop.xlane.xlu1 %1562 }
 0x77e   : > { %v1574_v60 = vsub.f32 %v3491_v11, %v1554_v51  ;;  %v1577_v2 = vsub.f32 %v3493_v12, %v1563_v54 }
 0x77f   : > { %v1640_v62 = vpack.c.bf16 %v1632_v36, %v1632_v36  ;;  %v2473_v36 = vld [vmem:[#allocation5 + $0x60] sm:$0xff]  }
 0x780   : > { %v3546_v63 = vpop.eup %2678  ;;  %v1583_v53 = vmul.f32 1.442695, %v1574_v60  ;;  %v3548_v0 = vpop.f32.mrf.mxu1  ;;  %v1589_v1 = vmul.f32 1.442695, %v1577_v2 }
 0x781   : > { %v1673_v25 = vunpack.c.l.b16 %v1640_v62  ;;  %v1597_v43 = vsel %vm851_vm12, %v3546_v63, 0.0 }
 0x782   : > { %1598 = vadd.xlane.f32.xlu2 %v1597_v43  ;;  %2680 = vpow2.f32 %v1583_v53  ;;  %v2448_v53 = vunpack.c.l.bf16 %v2473_v36 }
 0x783   : > { %v1674_v3 = vpack.c.b16 %v1673_v25, %v1672_v56  ;;  %2682 = vpow2.f32 %v1589_v1 }
 0x785   : > { %v1566_v5 = vpop.xlane.xlu2 %1565  ;;  %2367 = vmatmul.msk.bf16.vlgmr.msrb.gmra.mxu3 %vm851_vm12, %v1674_v3 }
 0x786   : > { %v1578_v10 = vsub.f32 %v3500_v22, %v1566_v5 }
 0x788   : > { %v3554_v6 = vpop.f32.mrf.mxu1  ;;  %v2681_v9 = vpop.eup %2680  ;;  %v1591_v13 = vmul.f32 1.442695, %v1578_v10 }
 0x789   : > { %v1353_v11 = vpack.c.bf16 %v3554_v6, %v3548_v0  ;;  %v1600_v12 = vsel %vm851_vm12, %v2681_v9, 0.0  ;;  %v3561_v17 = vpop.eup %2682  ;;  %v1355_v0 = vpack.c.bf16 %v3451_v58, %v3447_v45 }
 0x78a   : > { %1601 = vadd.xlane.f32.xlu1 %v1600_v12  ;;  %2684 = vpow2.f32 %v1591_v13  ;;  %v1609_v19 = vsel %vm851_vm12, %v3561_v17, 0.0  ;;  %v1620_v24 = vpop.xlane.xlu0 %1619  ;;  %v2449_v12 = vunpack.c.h.bf16 %v2473_v36 }
 0x78d   : > { %v1810_v16 = vpop.permute.xlu2 %1809 }
 0x78e   : > { %2374 = vmatmul.msk.bf16.vlgmr.msrb.gmra.mxu1 %vm749_vm11, %v1810_v16 }
 0x790   : > { %v3565_v21 = vpop.eup %2684  ;;  %v3581_v23 = vpop.f32.mrf.mxu1 }
 0x791   : > { %v1612_v22 = vsel %vm851_vm12, %v3565_v21, 0.0 }
 0x792   : > { %1610 = vadd.xlane.f32.xlu1 %v1609_v19 }
 0x795   : > { %v1701_v15 = vpop.permute.xlu1 %1700 }
 0x796   : > { %1713 = vmatpush.bf16.msrb.mxu2 %v1701_v15 }
 0x798   : > { %v3585_v14 = vpop.f32.mrf.mxu1 }
 0x79a   : > { %1835 = vrot.lane.b32.xlu2 %v3287_v7, %s2966_s11  ;;  %1613 = vadd.xlane.f32.xlu1 %v1612_v22 }
 0x79d   : > { %v3583_v27 = vpop.permute.xlu0 %1859 }
 0x7a0   : > { %v3587_v39 = vpop.f32.mrf.mxu1 }
 0x7a2   : > { %1833 = vrot.lane.b32.xlu2 %v3287_v7, %s2967_s17 }
 0x7a8   : > { %v3594_v29 = vpop.f32.mrf.mxu1 }
 0x7aa   : > { %1857 = vrot.lane.b32.xlu2 %v3291_v35, %s2967_s17 }
 0x7b2   : > { %1883 = vrot.lane.b32.xlu2 %v3299_v30, %s2966_s11 }
 0x7b3   : > { %1725 = vrot.lane.b32.xlu1 %v3299_v30, %s2965_s14  ;;  %s2878_s14 = scalar_lea.hbm %s3842_s8, 128 }
 0x7ba   : > { %1881 = vrot.lane.b32.xlu2 %v3299_v30, %s2967_s17 }
 0x7c0   : > { %v1617_v42 = vpop.xlane.xlu1 %1616 }
 0x7c8   : > { %v1158_v31 = vpop.xlane.xlu0 %1157 }
 0x7c9   : > { %v1180_v32 = vsub.f32 %v3538_v33, %v1158_v31  ;;  %v3602_v33 = vpop.f32.mrf.mxu1 }
 0x7cb   : > { %v1188_v37 = vmul.f32 1.442695, %v1180_v32 }
 0x7cd   : > { %2686 = vpow2.f32 %v1188_v37 }
 0x7d1   : > { %v3604_v4 = vpop.f32.mrf.mxu1 }
 0x7d3   : > { %v3598_v18 = vpop.eup %2686 }
 0x7d4   : > { %v1204_v57 = vsel %vm851_vm12, %v3598_v18, 0.0 }
 0x7d9   : > { %v3606_v59 = vpop.f32.mrf.mxu1 }
 0x7dd   : > { %1160 = vmax.xlane.f32.xlu1 %v1159_v40 }
 0x7e1   : > { %v3609_v47 = vpop.f32.mrf.mxu1 }
 0x7e3   : > { %1205 = vadd.xlane.f32.xlu2 %v1204_v57 }
 0x7f5   : > { %v1599_v50 = vpop.xlane.xlu2 %1598 }
 0x7f6   : > { %2688 = vrcp.f32 %v1599_v50 }
 0x7fc   : > { %v2689_v41 = vpop.eup %2688 }
 0x7fd   : > { %v1836_v34 = vpop.permute.xlu2 %1835  ;;  %v1602_v38 = vpop.xlane.xlu1 %1601  ;;  %v1629_v46 = vmul.f32 %v2689_v41, %v3546_v63 }
 0x7fe   : > { %2690 = vrcp.f32 %v1602_v38  ;;  %v1841_v63 = vsel %vm749_vm11, %v1836_v34, 0 }
 0x7ff   : > { %v1637_v51 = vpack.c.bf16 %v1629_v46, %v1629_v46 }
 0x801   : > { %v1647_v56 = vunpack.c.l.b16 %v1637_v51 }
 0x804   : > { %v2691_v48 = vpop.eup %2690 }
 0x805   : > { %v1834_v20 = vpop.permute.xlu2 %1833  ;;  %v1630_v54 = vmul.f32 %v2691_v48, %v2681_v9  ;;  %v1611_v60 = vpop.xlane.xlu1 %1610 }
 0x806   : > { %2692 = vrcp.f32 %v1611_v60 }
 0x807   : > { %v1638_v62 = vpack.c.bf16 %v1630_v54, %v1630_v54  ;;  %v1865_v54 = vsel %vm749_vm11, %v3583_v27, 0 }
 0x809   : > { %v1648_v25 = vunpack.c.l.b16 %v1638_v62 }
 0x80b   : > { %v1828_v2 = vpop.f32.mrf.mxu1  ;;  %v1649_v43 = vpack.c.b16 %v1648_v25, %v1647_v56 }
 0x80c   : > { %v3611_v3 = vadd.f32 %v2448_v53, %v1828_v2  ;;  %v2693_v9 = vpop.eup %2692  ;;  %v3646_v2 = vpop.f32.mrf.mxu3 }
 0x80d   : > { %v1858_v1 = vpop.permute.xlu2 %1857  ;;  %2366 = vmatmul.msk.bf16.vlgmr.msra.gmra.mxu2 %vm851_vm12, %v1649_v43  ;;  %v1614_v5 = vpop.xlane.xlu1 %1613  ;;  %v1633_v13 = vmul.f32 %v2693_v9, %v3561_v17  ;;  %v2476_v43 = vld [vmem:[#allocation5 + $0x78] sm:$0xff]  }
 0x80e   : > { %v1905_v10 = vsel %vm851_vm12, %v3611_v3, -inf  ;;  %1850 = vmatpush.bf16.xpose.msra.mxu2 %v1841_v63  ;;  %2694 = vrcp.f32 %v1614_v5 }
 0x80f   : > { %1906 = vmax.xlane.f32.xlu1 %v1905_v10  ;;  %2696 = vrcp.f32 %v1617_v42  ;;  %v1641_v31 = vpack.c.bf16 %v1633_v13, %v1633_v13 }
 0x810   : > { %2698 = vrcp.f32 %v1620_v24 }
 0x811   : > { %v1697_v17 = vunpack.c.l.b16 %v1641_v31 }
 0x813   : > { %v1830_v16 = vpop.f32.mrf.mxu1 }
 0x814   : > { %v3618_v19 = vadd.f32 %v2449_v12, %v1830_v16  ;;  %v2695_v15 = vpop.eup %2694  ;;  %v3652_v9 = vpop.f32.mrf.mxu3 }
 0x815   : > { %v1884_v22 = vpop.permute.xlu2 %1883  ;;  %v1634_v32 = vmul.f32 %v2695_v15, %v3565_v21  ;;  %v2697_v57 = vpop.eup %2696  ;;  %v1746_v49 = vpack.c.bf16 %v3652_v9, %v3646_v2 }
 0x816   : > { %v1889_v55 = vsel %vm749_vm11, %v1884_v22, 0  ;;  %v1908_v37 = vsel %vm851_vm12, %v3618_v19, -inf  ;;  %v2699_v42 = vpop.eup %2698  ;;  %v1635_v34 = vmul.f32 %v2697_v57, %v3530_v52 }
 0x817   : > { %1898 = vmatpush.bf16.xpose.msra.mxu1 %v1889_v55  ;;  %1909 = vmax.xlane.f32.xlu2 %v1908_v37  ;;  %v1642_v40 = vpack.c.bf16 %v1634_v32, %v1634_v32  ;;  %v1636_v41 = vmul.f32 %v2699_v42, %v3508_v26  ;;  %v2475_v32 = vld [vmem:[#allocation5 + $0x70] sm:$0xff]   ;;  %v2460_v42 = vunpack.c.l.bf16 %v2476_v43 }
 0x818   : > { %v1643_v21 = vpack.c.bf16 %v1635_v34, %v1635_v34  ;;  %v2456_v55 = vunpack.c.l.bf16 %v2475_v32 }
 0x819   : > { %v1698_v50 = vunpack.c.l.b16 %v1642_v40  ;;  %v1644_v46 = vpack.c.bf16 %v1636_v41, %v1636_v41 }
 0x81a   : > { %v1722_v48 = vunpack.c.l.b16 %v1643_v21 }
 0x81b   : > { %v1699_v38 = vpack.c.b16 %v1698_v50, %v1697_v17  ;;  %v1723_v36 = vunpack.c.l.b16 %v1644_v46  ;;  %v2474_v46 = vld [vmem:[#allocation5 + $0x68] sm:$0xff]  }
 0x81d   : > { %v1882_v24 = vpop.permute.xlu2 %1881  ;;  %2368 = vmatmul.msk.bf16.vlgmr.msrb.gmra.mxu2 %vm851_vm12, %v1699_v38  ;;  %v1724_v60 = vpack.c.b16 %v1723_v36, %v1722_v48  ;;  %v2457_v38 = vunpack.c.h.bf16 %v2475_v32 }
 0x81e   : > { %2377 = vmatmul.msk.bf16.vlgmr.msra.gmra.mxu1 %vm749_vm11, %v1882_v24 }
 0x825   : > { %v1726_v51 = vpop.permute.xlu1 %1725 }
 0x826   : > { %1738 = vmatpush.bf16.msra.mxu3 %v1726_v51 }
 0x829   : > { %2369 = vmatmul.msk.bf16.vlgmr.msra.gmra.mxu3 %vm851_vm12, %v1724_v60  ;;  %v2452_v60 = vunpack.c.l.bf16 %v2474_v46 }
 0x82a   : > { %1874 = vmatpush.bf16.xpose.msrb.mxu3 %v1865_v54 }
 0x82d   : > { %2375 = vmatmul.msk.bf16.vlgmr.msra.gmra.mxu2 %vm749_vm11, %v1834_v20 }
 0x839   : > { %2376 = vmatmul.msk.bf16.vlgmr.msrb.gmra.mxu3 %vm749_vm11, %v1858_v1  ;;  %v2461_v1 = vunpack.c.h.bf16 %v2476_v43 }
 0x850   : > { %v1161_v26 = vpop.xlane.xlu1 %1160 }
 0x851   : > { %v1181_v52 = vsub.f32 %v3592_v28, %v1161_v26 }
 0x853   : > { %v1190_v62 = vmul.f32 1.442695, %v1181_v52 }
 0x855   : > { %2700 = vpow2.f32 %v1190_v62 }
 0x856   : > { %v1206_v37 = vpop.xlane.xlu2 %1205 }
 0x85b   : > { %v3634_v53 = vpop.eup %2700 }
 0x85c   : > { %v1207_v56 = vsel %vm851_vm12, %v3634_v53, 0.0 }
 0x85d   : > { %1208 = vadd.xlane.f32.xlu0 %v1207_v56 }
 0x871   : > { %1257 = vrot.lane.b32.xlu0 %v3283_v44, %s2962_s21  ;;  %s2874_s21 = scalar_lea.hbm %s2873_s18, 64 }
 0x872   : > { %p2875_p1 = scmp.ne.s32.totalorder %s2873_s18, %s2874_s21  ;;  %p2880_p12 = scmp.lt.s32.totalorder %s2878_s14, %s2874_s21 }
 0x874   : > { %p2876_p4 = pnand %p2875_p1, %p3111_p5  ;;  %p2881_p13 = por %p2880_p12, %p2879_p10 }
 0x876   : > { %p2877_p8 = pneg %p2876_p4 }
 0x878   : > { %p2882_p0 = pnand %p2881_p13, %p2877_p8 }
 0x882   : > { %v1907_v40 = vpop.xlane.xlu1 %1906 }
 0x883   : > { %v1929_v50 = vsub.f32 %v3611_v3, %v1907_v40 }
 0x885   : > { %v1937_v24 = vmul.f32 1.442695, %v1929_v50 }
 0x887   : > { %2702 = vpow2.f32 %v1937_v24 }
 0x88a   : > { %v1910_v41 = vpop.xlane.xlu2 %1909 }
 0x88b   : > { %v1930_v51 = vsub.f32 %v3618_v19, %v1910_v41 }
 0x88d   : > { %v1939_v52 = vmul.f32 1.442695, %v1930_v51  ;;  %v3671_v56 = vpop.eup %2702 }
 0x88f   : > { %2704 = vpow2.f32 %v1939_v52 }
 0x890   : > { %v3640_v27 = vpop.f32.mrf.mxu2 }
 0x895   : > { %v2705_v32 = vpop.eup %2704 }
 0x898   : > { %v3642_v25 = vpop.f32.mrf.mxu2 }
 0x899   : > { %v1745_v20 = vpack.c.bf16 %v3642_v25, %v3640_v27 }
 0x89b   : > { %v1900_v28 = vpop.f32.mrf.mxu1 }
 0x89c   : > { %v1901_v21 = vadd.f32 %v2460_v42, %v1900_v28  ;;  %v2453_v28 = vunpack.c.h.bf16 %v2474_v46 }
 0x89e   : > { %v1923_v26 = vsel %vm851_vm12, %v1901_v21, -inf }
 0x8a0   : > { %v3648_v63 = vpop.f32.mrf.mxu2 }
 0x8a3   : > { %v1902_v5 = vpop.f32.mrf.mxu1 }
 0x8a4   : > { %v3650_v10 = vadd.f32 %v2461_v1, %v1902_v5  ;;  %v1953_v1 = vsel %vm851_vm12, %v3671_v56, 0.0 }
 0x8a6   : > { %v1926_v12 = vsel %vm851_vm12, %v3650_v10, -inf }
 0x8a7   : > { %1927 = vmax.xlane.f32.xlu0 %v1926_v12 }
 0x8a8   : > { %v3656_v13 = vpop.f32.mrf.mxu2 }
 0x8a9   : > { %v1747_v16 = vpack.c.bf16 %v3656_v13, %v3648_v63  ;;  %v693_v13 = vld [vmem:[#allocation8 + $0xc] sm:$0xf] }
 0x8ac   : > { %v3660_v15 = vpop.f32.mrf.mxu3 }
 0x8b0   : > { %v1852_v54 = vpop.f32.mrf.mxu2 }
 0x8b1   : > { %v1853_v62 = vadd.f32 %v2452_v60, %v1852_v54 }
 0x8b3   : > { %v1911_v43 = vsel %vm851_vm12, %v1853_v62, -inf }
 0x8b4   : > { %v3662_v22 = vpop.f32.mrf.mxu3 }
 0x8b5   : > { %v1748_v31 = vpack.c.bf16 %v3662_v22, %v3660_v15 }
 0x8b8   : > { %v1854_v19 = vpop.f32.mrf.mxu2 }
 0x8b9   : > { %v1855_v12 = vadd.f32 %v2453_v28, %v1854_v19 }
 0x8bb   : > { %v1914_v40 = vsel %vm851_vm12, %v1855_v12, -inf }
 0x8bc   : > { %v1876_v57 = vpop.f32.mrf.mxu3 }
 0x8bd   : > { %v1877_v17 = vadd.f32 %v2456_v55, %v1876_v57  ;;  %v1956_v57 = vsel %vm851_vm12, %v2705_v32, 0.0 }
 0x8bf   : > { %v1917_v34 = vsel %vm851_vm12, %v1877_v17, -inf }
 0x8c0   : > { %1918 = vmax.xlane.f32.xlu1 %v1917_v34 }
 0x8c4   : > { %v1878_v48 = vpop.f32.mrf.mxu3 }
 0x8c5   : > { %v1879_v36 = vadd.f32 %v2457_v38, %v1878_v48 }
 0x8c7   : > { %v1920_v3 = vsel %vm851_vm12, %v1879_v36, -inf }
 0x8c8   : > { %1924 = vmax.xlane.f32.xlu1 %v1923_v26  ;;  %1921 = vmax.xlane.f32.xlu2 %v1920_v3 }
 0x8d0   : > { %1912 = vmax.xlane.f32.xlu1 %v1911_v43  ;;  %1954 = vadd.xlane.f32.xlu2 %v1953_v1  ;;  %v1209_v5 = vpop.xlane.xlu0 %1208 }
 0x8d1   : > { %2706 = vrcp.f32 %v1209_v5 }
 0x8d2   : > { %2708 = vrcp.f32 %v1206_v37 }
 0x8d7   : > { %v2707_v55 = vpop.eup %2706 }
 0x8d8   : > { %v2709_v50 = vpop.eup %2708  ;;  %1915 = vmax.xlane.f32.xlu2 %v1914_v40  ;;  %1957 = vadd.xlane.f32.xlu1 %v1956_v57  ;;  %v1237_v42 = vmul.f32 %v2707_v55, %v3634_v53  ;;  %v691_v57 = vld [vmem:[#allocation8 + $0x4] sm:$0xf] }
 0x8d9   : > { %v1236_v34 = vmul.f32 %v2709_v50, %v3598_v18 }
 0x8da   : > { %v1245_v38 = vpack.c.bf16 %v1237_v42, %v1237_v42 }
 0x8db   : > { %v1244_v24 = vpack.c.bf16 %v1236_v34, %v1236_v34  ;;  %v1370_v34 = vsel %vm1368_vm13, %v691_v57, 0 }
 0x8dc   : > { %v1255_v41 = vunpack.c.l.b16 %v1245_v38 }
 0x8dd   : > { %v1254_v46 = vunpack.c.l.b16 %v1244_v24 }
 0x8df   : > { %v1256_v37 = vpack.c.b16 %v1255_v41, %v1254_v46 }
 0x8e3   : > { %v1258_v48 = vpop.permute.xlu0 %1257 }
 0x8e4   : > { %1270 = vmatpush.bf16.msrb.mxu0 %v1258_v48 }
 0x8e7   : > { %2350 = vmatmul.msk.bf16.vlgmr.msrb.gmra.mxu0 %vm851_vm12, %v1256_v37 }
 0x8e8   : > { %1379 = vmatpush.bf16.msra.mxu0 %v1370_v34  ;;  %v2118_v34 = vsel %vm1368_vm13, %v693_v13, 0 }
 0x8f0   : > { %2006 = vrot.lane.b32.xlu2 %v3283_v44, %s2968_s2 }
 0x933   : > { %v1919_v51 = vpop.xlane.xlu1 %1918 }
 0x934   : > { %v1933_v54 = vsub.f32 %v1877_v17, %v1919_v51 }
 0x936   : > { %v1945_v60 = vmul.f32 1.442695, %v1933_v54 }
 0x938   : > { %2710 = vpow2.f32 %v1945_v60 }
 0x93b   : > { %v1925_v53 = vpop.xlane.xlu1 %1924  ;;  %v1922_v26 = vpop.xlane.xlu2 %1921 }
 0x93c   : > { %v1934_v18 = vsub.f32 %v1879_v36, %v1922_v26  ;;  %v1935_v28 = vsub.f32 %v1901_v21, %v1925_v53 }
 0x93e   : > { %v3683_v3 = vpop.eup %2710  ;;  %v1947_v52 = vmul.f32 1.442695, %v1934_v18  ;;  %v1949_v1 = vmul.f32 1.442695, %v1935_v28 }
 0x93f   : > { %v1965_v43 = vsel %vm851_vm12, %v3683_v3, 0.0 }
 0x940   : > { %1966 = vadd.xlane.f32.xlu2 %v1965_v43  ;;  %2712 = vpow2.f32 %v1947_v52 }
 0x943   : > { %v1913_v19 = vpop.xlane.xlu1 %1912  ;;  %v1955_v5 = vpop.xlane.xlu2 %1954 }
 0x944   : > { %v1931_v44 = vsub.f32 %v1853_v62, %v1913_v19  ;;  %2714 = vrcp.f32 %v1955_v5  ;;  %v1928_v19 = vpop.xlane.xlu0 %1927 }
 0x945   : > { %2716 = vpow2.f32 %v1949_v1  ;;  %v1936_v5 = vsub.f32 %v3650_v10, %v1928_v19 }
 0x946   : > { %v1941_v55 = vmul.f32 1.442695, %v1931_v44  ;;  %v3687_v17 = vpop.eup %2712 }
 0x947   : > { %v1968_v36 = vsel %vm851_vm12, %v3687_v17, 0.0 }
 0x948   : > { %2718 = vpow2.f32 %v1941_v55  ;;  %1969 = vadd.xlane.f32.xlu0 %v1968_v36 }
 0x94a   : > { %v2715_v50 = vpop.eup %2714 }
 0x94b   : > { %v1958_v21 = vpop.xlane.xlu1 %1957  ;;  %v1916_v40 = vpop.xlane.xlu2 %1915  ;;  %v1985_v41 = vmul.f32 %v2715_v50, %v3671_v56 }
 0x94c   : > { %2720 = vrcp.f32 %v1958_v21  ;;  %v1932_v42 = vsub.f32 %v1855_v12, %v1916_v40  ;;  %v3692_v38 = vpop.eup %2716 }
 0x94d   : > { %v1971_v48 = vsel %vm851_vm12, %v3692_v38, 0.0  ;;  %v1993_v37 = vpack.c.bf16 %v1985_v41, %v1985_v41 }
 0x94e   : > { %v3694_v62 = vpop.eup %2718  ;;  %v1943_v24 = vmul.f32 1.442695, %v1932_v42 }
 0x94f   : > { %v1959_v46 = vsel %vm851_vm12, %v3694_v62, 0.0  ;;  %v2003_v26 = vunpack.c.l.b16 %v1993_v37 }
 0x950   : > { %2722 = vpow2.f32 %v1943_v24  ;;  %1960 = vadd.xlane.f32.xlu1 %v1959_v46  ;;  %1972 = vadd.xlane.f32.xlu0 %v1971_v48 }
 0x952   : > { %v2721_v12 = vpop.eup %2720 }
 0x953   : > { %v1986_v51 = vmul.f32 %v2721_v12, %v2705_v32  ;;  %v2007_v54 = vpop.permute.xlu2 %2006 }
 0x954   : > { %2019 = vmatpush.bf16.msrb.mxu2 %v2007_v54 }
 0x955   : > { %v1994_v60 = vpack.c.bf16 %v1986_v51, %v1986_v51 }
 0x956   : > { %v2723_v53 = vpop.eup %2722 }
 0x957   : > { %v2004_v18 = vunpack.c.l.b16 %v1994_v60  ;;  %v1962_v56 = vsel %vm851_vm12, %v2723_v53, 0.0 }
 0x958   : > { %2081 = vrot.lane.b32.xlu2 %v3299_v30, %s2968_s2  ;;  %1963 = vadd.xlane.f32.xlu1 %v1962_v56  ;;  %v692_v30 = vld [vmem:[#allocation8 + $0x8] sm:$0xf] }
 0x959   : > { %v2005_v52 = vpack.c.b16 %v2004_v18, %v2003_v26  ;;  %v1762_v1 = vsel %vm1368_vm13, %v692_v30, 0 }
 0x95a   : > { %1771 = vmatpush.bf16.msrb.mxu0 %v1762_v1 }
 0x95b   : > { %2378 = vmatmul.msk.bf16.vlgmr.msrb.gmra.mxu2 %vm851_vm12, %v2005_v52 }
 0x964   : > { %v1272_v28 = vpop.f32.mrf.mxu0  ;;  %2056 = vrot.lane.b32.xlu0 %v3291_v35, %s2968_s2  ;;  %v1951_v35 = vmul.f32 1.442695, %v1936_v5 }
 0x966   : > { %2724 = vpow2.f32 %v1951_v35 }
 0x96c   : > { %v1274_v32 = vpop.f32.mrf.mxu0 }
 0x96d   : > { %v1352_v43 = vpack.c.bf16 %v1274_v32, %v1272_v28 }
 0x96f   : > { %2354 = vmatmul.msk.bf16.vlgmr.msra.gmra.mxu0 %vm749_vm11, %v1352_v43 }
 0x971   : > { %2031 = vrot.lane.b32.xlu1 %v3287_v7, %s2968_s2  ;;  %v2725_v7 = vpop.eup %2724 }
 0x972   : > { %v1974_v44 = vsel %vm851_vm12, %v2725_v7, 0.0 }
 0x97f   : > { %2355 = vmatmul.msk.bf16.gmra.mxu0 %vm749_vm11, %v1353_v11 }
 0x98f   : > { %2356 = vmatmul.msk.bf16.gmra.mxu0 %vm749_vm11, %v1354_v61 }
 0x99b   : > { %1975 = vadd.xlane.f32.xlu1 %v1974_v44 }
 0x99f   : > { %2357 = vmatmul.msk.bf16.gmra.mxu0 %vm749_vm11, %v1355_v0 }
 0x9af   : > { %2370 = vmatmul.msk.bf16.vlgmr.msrb.gmra.mxu0 %vm749_vm11, %v1745_v20 }
 0x9b3   : > { %v1967_v6 = vpop.xlane.xlu2 %1966 }
 0x9bb   : > { %v2082_v11 = vpop.permute.xlu2 %2081  ;;  %v1970_v8 = vpop.xlane.xlu0 %1969 }
 0x9bc   : > { %2094 = vmatpush.bf16.msra.mxu2 %v2082_v11  ;;  %2726 = vrcp.f32 %v1970_v8  ;;  %v3755_v11 = vld [vmem:[%s3839_s5] ss:$0 sm:$0xff] }
 0x9bd   : > { %2728 = vrcp.f32 %v1967_v6 }
 0x9bf   : > { %2371 = vmatmul.msk.bf16.gmra.mxu0 %vm749_vm11, %v1746_v49 }
 0x9c2   : > { %v2727_v45 = vpop.eup %2726 }
 0x9c3   : > { %v1961_v61 = vpop.xlane.xlu1 %1960  ;;  %v2729_v58 = vpop.eup %2728  ;;  %v1990_v10 = vmul.f32 %v2727_v45, %v3687_v17 }
 0x9c4   : > { %v1989_v27 = vmul.f32 %v2729_v58, %v3683_v3  ;;  %v1973_v25 = vpop.xlane.xlu0 %1972 }
 0x9c5   : > { %v1998_v20 = vpack.c.bf16 %v1990_v10, %v1990_v10 }
 0x9c6   : > { %v1997_v2 = vpack.c.bf16 %v1989_v27, %v1989_v27 }
 0x9c7   : > { %v2054_v9 = vunpack.c.l.b16 %v1998_v20 }
 0x9c8   : > { %v2053_v21 = vunpack.c.l.b16 %v1997_v2 }
 0x9ca   : > { %v2055_v17 = vpack.c.b16 %v2054_v9, %v2053_v21 }
 0x9cb   : > { %v1964_v55 = vpop.xlane.xlu1 %1963 }
 0x9cc   : > { %2730 = vrcp.f32 %v1964_v55 }
 0x9cd   : > { %2732 = vrcp.f32 %v1961_v61 }
 0x9ce   : > { %2734 = vrcp.f32 %v1973_v25 }
 0x9cf   : > { %2372 = vmatmul.msk.bf16.gmra.mxu0 %vm749_vm11, %v1747_v16 }
 0x9d2   : > { %v2731_v36 = vpop.eup %2730 }
 0x9d3   : > { %v2733_v57 = vpop.eup %2732  ;;  %v1988_v50 = vmul.f32 %v2731_v36, %v2723_v53 }
 0x9d4   : > { %v1987_v3 = vmul.f32 %v2733_v57, %v3694_v62  ;;  %v2735_v22 = vpop.eup %2734 }
 0x9d5   : > { %v1996_v42 = vpack.c.bf16 %v1988_v50, %v1988_v50 }
 0x9d6   : > { %v2057_v40 = vpop.permute.xlu0 %2056  ;;  %v1995_v63 = vpack.c.bf16 %v1987_v3, %v1987_v3 }
 0x9d7   : > { %2069 = vmatpush.bf16.msrb.mxu1 %v2057_v40  ;;  %v2029_v16 = vunpack.c.l.b16 %v1996_v42 }
 0x9d8   : > { %v2028_v24 = vunpack.c.l.b16 %v1995_v63 }
 0x9da   : > { %2380 = vmatmul.msk.bf16.vlgmr.msrb.gmra.mxu1 %vm851_vm12, %v2055_v17  ;;  %v2030_v46 = vpack.c.b16 %v2029_v16, %v2028_v24 }
 0x9de   : > { %v2021_v62 = vpop.f32.mrf.mxu2 }
 0x9df   : > { %2373 = vmatmul.msk.bf16.gmra.mxu0 %vm749_vm11, %v1748_v31  ;;  %v1991_v31 = vmul.f32 %v2735_v22, %v3692_v38 }
 0x9e1   : > { %v1999_v51 = vpack.c.bf16 %v1991_v31, %v1991_v31 }
 0x9e3   : > { %v2032_v41 = vpop.permute.xlu1 %2031  ;;  %v2078_v53 = vunpack.c.l.b16 %v1999_v51 }
 0x9e4   : > { %2044 = vmatpush.bf16.msra.mxu3 %v2032_v41 }
 0x9e6   : > { %v2023_v48 = vpop.f32.mrf.mxu2 }
 0x9e7   : > { %2379 = vmatmul.msk.bf16.vlgmr.msra.gmra.mxu3 %vm851_vm12, %v2030_v46  ;;  %v2101_v12 = vpack.c.bf16 %v2023_v48, %v2021_v62 }
 0x9e8   : > { %2127 = vmatpush.bf16.msrb.mxu3 %v2118_v34 }
 0x9ec   : > { %v1381_v56 = vpop.f32.mrf.mxu0 }
 0x9ed   : > { %v1426_v0 = vadd.f32 %v3581_v23, %v1381_v56 }
 0x9f4   : > { %v1383_v52 = vpop.f32.mrf.mxu0 }
 0x9f5   : > { %v1428_v58 = vadd.f32 %v3585_v14, %v1383_v52 }
 0x9f7   : > { %2382 = vmatmul.msk.bf16.vlgmr.msrb.gmra.mxu3 %vm749_vm11, %v2101_v12 }
 0x9fc   : > { %v1386_v28 = vpop.f32.mrf.mxu0 }
 0x9fd   : > { %v1431_v21 = vadd.f32 %v3587_v39, %v1386_v28 }
 0xa04   : > { %v1388_v32 = vpop.f32.mrf.mxu0 }
 0xa05   : > { %v1433_v42 = vadd.f32 %v3594_v29, %v1388_v32 }
 0xa0c   : > { %v1391_v43 = vpop.f32.mrf.mxu0 }
 0xa0d   : > { %v1436_v39 = vadd.f32 %v3602_v33, %v1391_v43 }
 0xa0e   : > { %v1976_v15 = vpop.xlane.xlu1 %1975 }
 0xa0f   : > { %2736 = vrcp.f32 %v1976_v15 }
 0xa14   : > { %v1393_v30 = vpop.f32.mrf.mxu0 }
 0xa15   : > { %v2737_v37 = vpop.eup %2736  ;;  %v1438_v12 = vadd.f32 %v3604_v4, %v1393_v30 }
 0xa16   : > { %v1992_v54 = vmul.f32 %v2737_v37, %v2725_v7 }
 0xa18   : > { %v2000_v60 = vpack.c.bf16 %v1992_v54, %v1992_v54 }
 0xa1a   : > { %v2079_v26 = vunpack.c.l.b16 %v2000_v60 }
 0xa1c   : > { %v2080_v18 = vpack.c.b16 %v2079_v26, %v2078_v53  ;;  %v1396_v1 = vpop.f32.mrf.mxu0 }
 0xa1d   : > { %v1441_v51 = vadd.f32 %v3606_v59, %v1396_v1 }
 0xa1e   : > { %2381 = vmatmul.msk.bf16.vlgmr.msra.gmra.mxu2 %vm851_vm12, %v2080_v18 }
 0xa24   : > { %v3748_v19 = vpop.f32.mrf.mxu0 }
 0xa25   : > { %v1443_v18 = vadd.f32 %v3609_v47, %v3748_v19 }
 0xa2c   : > { %v1773_v7 = vpop.f32.mrf.mxu0 }
 0xa2d   : > { %v1793_v6 = vadd.f32 %v1773_v7, %v1426_v0 }
 0xa34   : > { %v1775_v45 = vpop.f32.mrf.mxu0 }
 0xa35   : > { %v1794_v10 = vadd.f32 %v1775_v45, %v1428_v58 }
 0xa3c   : > { %v1778_v36 = vpop.f32.mrf.mxu0 }
 0xa3d   : > { %v1795_v40 = vadd.f32 %v1778_v36, %v1431_v21 }
 0xa44   : > { %v1780_v57 = vpop.f32.mrf.mxu0 }
 0xa45   : > { %v1796_v63 = vadd.f32 %v1780_v57, %v1433_v42 }
 0xa4c   : > { %v1783_v34 = vpop.f32.mrf.mxu0 }
 0xa4d   : > { %v1797_v41 = vadd.f32 %v1783_v34, %v1436_v39 }
 0xa54   : > { %v1785_v29 = vpop.f32.mrf.mxu0 }
 0xa55   : > { %v1798_v15 = vadd.f32 %v1785_v29, %v1438_v12 }
 0xa57   : > { %v2071_v44 = vpop.f32.mrf.mxu1 }
 0xa5c   : > { %v1788_v37 = vpop.f32.mrf.mxu0 }
 0xa5d   : > { %v1799_v54 = vadd.f32 %v1788_v37, %v1441_v51 }
 0xa5f   : > { %v2073_v23 = vpop.f32.mrf.mxu1 }
 0xa60   : > { %v2103_v27 = vpack.c.bf16 %v2073_v23, %v2071_v44 }
 0xa64   : > { %v1790_v26 = vpop.f32.mrf.mxu0 }
 0xa65   : > { %v1800_v59 = vadd.f32 %v1790_v26, %v1443_v18 }
 0xa6a   : > { %v2046_v38 = vpop.f32.mrf.mxu3 }
 0xa72   : > { %v2048_v5 = vpop.f32.mrf.mxu3 }
 0xa73   : > { %v2102_v35 = vpack.c.bf16 %v2048_v5, %v2046_v38 }
 0xa75   : > { %2383 = vmatmul.msk.bf16.gmra.mxu3 %vm749_vm11, %v2102_v35 }
 0xa7a   : > { %v2129_v49 = vpop.f32.mrf.mxu3 }
 0xa7b   : > { %v2149_v8 = vadd.f32 %v2129_v49, %v1793_v6 }
 0xa7d   : > { %v2161_v61 = vadd.f32 %v3755_v11, %v2149_v8 }
 0xa7f   : > { %2169 = vst.msk [vmem:[%s3761_s13] sm:$0xff] %vm417_vm0, %v2161_v61 }
 0xa82   : > { %v2131_v55 = vpop.f32.mrf.mxu3 }
 0xa83   : > { %v2150_v25 = vadd.f32 %v2131_v55, %v1794_v10 }
 0xa85   : > { %v2162_v20 = vadd.f32 %v3755_v11, %v2150_v25  ;;  %2384 = vmatmul.msk.bf16.gmra.mxu3 %vm749_vm11, %v2103_v27 }
 0xa87   : > { %2170 = vst.msk [vmem:[%s3761_s13 + $0x8] sm:$0xff] %vm417_vm0, %v2162_v20 }
 0xaa1   : > { %v2096_v14 = vpop.f32.mrf.mxu2 }
 0xaa9   : > { %v2098_v2 = vpop.f32.mrf.mxu2 }
 0xaaa   : > { %v2104_v9 = vpack.c.bf16 %v2098_v2, %v2096_v14 }
 0xaac   : > { %2385 = vmatmul.msk.bf16.gmra.mxu3 %vm749_vm11, %v2104_v9 }
 0xaf8   : > { %v2134_v17 = vpop.f32.mrf.mxu3 }
 0xaf9   : > { %v2151_v50 = vadd.f32 %v2134_v17, %v1795_v40 }
 0xafb   : > { %v2163_v3 = vadd.f32 %v3755_v11, %v2151_v50 }
 0xafd   : > { %2171 = vst.msk [vmem:[%s3761_s13 + $0x10] sm:$0xff] %vm417_vm0, %v2163_v3 }
 0xb00   : > { %v2136_v13 = vpop.f32.mrf.mxu3 }
 0xb01   : > { %v2152_v16 = vadd.f32 %v2136_v13, %v1796_v63 }
 0xb03   : > { %v2164_v24 = vadd.f32 %v3755_v11, %v2152_v16 }
 0xb05   : > { %2172 = vst.msk [vmem:[%s3761_s13 + $0x18] sm:$0xff] %vm417_vm0, %v2164_v24 }
 0xb08   : > { %v2139_v46 = vpop.f32.mrf.mxu3 }
 0xb09   : > { %v2153_v62 = vadd.f32 %v2139_v46, %v1797_v41 }
 0xb0b   : > { %v2165_v48 = vadd.f32 %v3755_v11, %v2153_v62 }
 0xb0d   : > { %2173 = vst.msk [vmem:[%s3761_s13 + $0x20] sm:$0xff] %vm417_vm0, %v2165_v48 }
 0xb10   : > { %v2141_v22 = vpop.f32.mrf.mxu3 }
 0xb11   : > { %v2154_v31 = vadd.f32 %v2141_v22, %v1798_v15 }
 0xb13   : > { %v2166_v33 = vadd.f32 %v3755_v11, %v2154_v31 }
 0xb15   : > { %2174 = vst.msk [vmem:[%s3761_s13 + $0x28] sm:$0xff] %vm417_vm0, %v2166_v33 }
 0xb2f   : > { %v2144_v60 = vpop.f32.mrf.mxu3 }
 0xb30   : > { %v2155_v53 = vadd.f32 %v2144_v60, %v1799_v54 }
 0xb32   : > { %v2167_v4 = vadd.f32 %v3755_v11, %v2155_v53 }
 0xb34   : > { %2175 = vst.msk [vmem:[%s3761_s13 + $0x30] sm:$0xff] %vm417_vm0, %v2167_v4 }
 0xb37   : > { %v2146_v56 = vpop.f32.mrf.mxu3 }
 0xb38   : > { %v2156_v52 = vadd.f32 %v2146_v56, %v1800_v59 }
 0xb3a   : > { %v2168_v28 = vadd.f32 %v3755_v11, %v2156_v52 }
 0xb3c   : > { %2176 = vst.msk [vmem:[%s3761_s13 + $0x38] sm:$0xff] %vm417_vm0, %v2168_v28 }
 0xb3d   : > { %2885 = shalt.err (!%p2882_p0)
}
 0xb3e   : > { %s2969_s22 = smov 128   ;;  %s2970_s2 = smov 8  }
 0xb3f   : > { %2491 = dma.vmem_to_hbm [thread:$0]  (%p3111_p5), %s2193_s1, 1024, %s2195_s16, %s2178_s30, %s2969_s22, %s2969_s22, %s2970_s2  }
 0xb40 PF: > { %s3865_s10 = sld [smem:[#allocation15_spill]]  ;;  %s2209_s13 = sand.u32 1, %s2928_s27  }
 0xb41   : > { %p2508_p3 = pnand %p2315_p11, %p3065_p6  ;;  %s2210_s23 = scalar_lea.sflag [#allocation4], %s2209_s13 }
 0xb43   : > { %p2509_p7 = pneg %p2508_p3 }
 0xb45   : > { %2923 = dma.done.wait (%p2509_p7), %s2210_s23, 1024  }
 0xb46   : > { %2925 = vsyncadd (%p2509_p7), %s2210_s23, 4294966272  ;;  %s26_s10 = sadd.s32 1, %s3865_s10   ;;  %s3866_s26 = sld [smem:[#allocation17_spill]] }
 0xb47   : > { %p23_p9 = scmp.ge.s32.totalorder %s26_s10, 4   ;;  %s3867_s27 = smov %s2932_s28 }
 0xb48   : > { %s3868_s28 = smov %s2936_s29  ;;  %s3869_s29 = smov %s3120_s12 }
 0xb49   : > { %s3870_s30 = smov %s2944_s9  ;;  %25 = sbr.rel (!%p23_p9) target bundleno = 12 (0xc), region = 110 }
 0xb4c   : > { %s3871_s9 = smov %s3866_s26 }
 0xb4e   :  { %2216 = vsyncpa [#allocation3], 1 }
 0xb4f   :  { %2218 = vsyncpa [#allocation3 + $0x1], 1 }
 0xb50   :  { %2219 = vsyncpa [#allocation6], 1 }
 0xb51   :  { %2220 = vsyncpa [#allocation9], 1 }
 0xb52   :  { %2221 = vsyncpa [#allocation4], 1 }
 0xb53   :  { %2223 = vsyncpa [#allocation4 + $0x1], 1 }

</bundles_post_ra>
